<compile_context>
chip_gen: v7x
topology: tpu7x:2x2x1
jax: 0.10.0
libtpu: 0.0.40
codegen_flags: <defaults>
</compile_context>

<pallas_src>
import functools

import jax
import jax.numpy as jnp
from jax import lax
from jax.experimental import pallas as pl
from jax.experimental.pallas import tpu as pltpu

LEAKY = 0.1


def _round_up(x, m):
    return (x + m - 1) // m * m


def _leaky(v):
    return jnp.where(v >= 0.0, v, LEAKY * v)


# ---------------------------------------------------------------------------
# Kernel 1: fused separable conv block
#   leaky(conv_(1,k)/(1,s)( leaky(conv_(k,1)/(s,1)(x)) ))
# One grid step per batch image; both convs + activations stay in VMEM.
# ---------------------------------------------------------------------------
def _convrelu2_kernel(x_ref, w1_ref, b1_ref, w2_ref, b2_ref, o_ref,
                      y1_ref, acc1_ref, acc2_ref, *,
                      k, stride, h_out, w_real, w8, pad2):
    # x_ref : (1, Hg, stride, W8, Cin)  H-padded/grouped, W zero-padded to W8
    # w1_ref: (k, Cin, C1)   b1_ref: (1, C1)
    # w2_ref: (k, C1, C2)    b2_ref: (1, C2)
    # o_ref : (1, h_out, w_real, C2)    (dense along W; caller subsamples)
    # y1_ref: (h_out, Msc, C1) f32      zero-padded intermediate for conv 2
    cin = x_ref.shape[-1]
    c1 = w1_ref.shape[-1]
    c2 = w2_ref.shape[-1]

    # ---- conv along H (kernel (k,1), stride (stride,1)), exact -------------
    acc1_ref[...] = jnp.zeros_like(acc1_ref)
    for dy in range(k):
        t, g = dy // stride, dy % stride
        lhs = x_ref[0, t:t + h_out, g, :, :].reshape(h_out * w8, cin)
        acc1_ref[...] += jnp.dot(lhs, w1_ref[dy],
                                 preferred_element_type=jnp.float32)
    y1 = _leaky(acc1_ref[...] + b1_ref[...]).reshape(h_out, w8, c1)

    # zero-padded copy so the second conv reads shifted contiguous windows
    y1_ref[...] = jnp.zeros_like(y1_ref)
    y1_ref[:, pad2:pad2 + w_real, :] = y1[:, :w_real, :]

    # ---- conv along W (kernel (1,k)), evaluated dense (stride 1) -----------
    acc2_ref[...] = jnp.zeros_like(acc2_ref)
    for dx in range(k):
        lhs = y1_ref[:, dx:dx + w8, :].astype(jnp.bfloat16)
        lhs = lhs.reshape(h_out * w8, c1)
        acc2_ref[...] += jnp.dot(lhs, w2_ref[dx],
                                 preferred_element_type=jnp.float32)
    y2 = _leaky(acc2_ref[...] + b2_ref[...]).reshape(h_out, w8, c2)
    o_ref[0] = y2[:, :w_real, :].astype(o_ref.dtype)


def convrelu2(x, p, k, stride):
    """x: (N, H, W, Cin) NHWC bf16 -> (N, H', W', C2) bf16."""
    x = x.astype(jnp.bfloat16)
    n, h, w, cin = x.shape
    w1, b1, w2, b2 = p["w1"], p["b1"], p["w2"], p["b2"]
    c1, c2 = w1.shape[-1], w2.shape[-1]
    pad = k // 2

    h_out = (h + 2 * pad - k) // stride + 1
    w8 = _round_up(w, 8)
    hp = h + 2 * pad
    hg = -(-hp // stride)

    xp = jnp.pad(x, ((0, 0), (pad, pad + hg * stride - hp),
                     (0, w8 - w), (0, 0)))
    xp = xp.reshape(n, hg, stride, w8, cin)

    msc = (k - 1) + w8
    kern = functools.partial(_convrelu2_kernel, k=k, stride=stride,
                             h_out=h_out, w_real=w, w8=w8, pad2=pad)
    out = pl.pallas_call(
        kern,
        out_shape=jax.ShapeDtypeStruct((n, h_out, w, c2), jnp.bfloat16),
        grid_spec=pltpu.PrefetchScalarGridSpec(
            num_scalar_prefetch=0,
            grid=(n,),
            in_specs=[
                pl.BlockSpec((1, hg, stride, w8, cin),
                             lambda i: (i, 0, 0, 0, 0)),
                pl.BlockSpec((k, cin, c1), lambda i: (0, 0, 0)),
                pl.BlockSpec((1, c1), lambda i: (0, 0)),
                pl.BlockSpec((k, c1, c2), lambda i: (0, 0, 0)),
                pl.BlockSpec((1, c2), lambda i: (0, 0)),
            ],
            out_specs=pl.BlockSpec((1, h_out, w, c2), lambda i: (i, 0, 0, 0)),
            scratch_shapes=[
                pltpu.VMEM((h_out, msc, c1), jnp.float32),
                pltpu.VMEM((h_out * w8, c1), jnp.float32),
                pltpu.VMEM((h_out * w8, c2), jnp.float32),
            ],
        ),
        compiler_params=pltpu.CompilerParams(
            dimension_semantics=("parallel",)),
    )(xp, w1, b1, w2, b2)

    if stride == 2:
        out = out[:, :, ::2, :]  # W-subsample; XLA fuses into next layer's pad
    return out


# ---------------------------------------------------------------------------
# Kernel 2: fused predict_flow head (3x3 conv + leaky -> 3x3 conv)
# ---------------------------------------------------------------------------
def _predict_flow_kernel(x_ref, wa_ref, ba_ref, wb_ref, bb_ref, o_ref, mid_ref,
                         *, h, w_real, w8):
    cin = x_ref.shape[-1]
    ca = wa_ref.shape[-1]
    cb = wb_ref.shape[-1]

    acc = jnp.zeros((h * w8, ca), jnp.float32)
    for dy in range(3):
        for dx in range(3):
            lhs = x_ref[0, dy:dy + h, dx:dx + w8, :].reshape(h * w8, cin)
            acc = acc + jnp.dot(lhs, wa_ref[dy, dx],
                                preferred_element_type=jnp.float32)
    ya = _leaky(acc + ba_ref[...]).reshape(h, w8, ca)

    mid_ref[...] = jnp.zeros_like(mid_ref)
    mid_ref[1:1 + h, 1:1 + w_real, :] = ya[:, :w_real, :]

    acc2 = jnp.zeros((h * w8, cb), jnp.float32)
    for dy in range(3):
        for dx in range(3):
            lhs = mid_ref[dy:dy + h, dx:dx + w8, :].astype(jnp.bfloat16)
            lhs = lhs.reshape(h * w8, ca)
            acc2 = acc2 + jnp.dot(lhs, wb_ref[dy, dx],
                                  preferred_element_type=jnp.float32)
    yb = (acc2 + bb_ref[...]).reshape(h, w8, cb)     # last conv: no activation
    o_ref[0] = yb[:, :w_real, :].astype(o_ref.dtype)


def predict_flow(x, p):
    x = x.astype(jnp.bfloat16)
    n, h, w, cin = x.shape
    wa, ba, wb, bb = p["wa"], p["ba"], p["wb"], p["bb"]
    ca, cb = wa.shape[-1], wb.shape[-1]
    w8 = _round_up(w, 8)
    xp = jnp.pad(x, ((0, 0), (1, 1), (1, w8 - w + 1), (0, 0)))
    kern = functools.partial(_predict_flow_kernel, h=h, w_real=w, w8=w8)
    out = pl.pallas_call(
        kern,
        out_shape=jax.ShapeDtypeStruct((n, h, w, cb), jnp.bfloat16),
        grid_spec=pltpu.PrefetchScalarGridSpec(
            num_scalar_prefetch=0,
            grid=(n,),
            in_specs=[
                pl.BlockSpec((1, h + 2, w8 + 2, cin), lambda i: (i, 0, 0, 0)),
                pl.BlockSpec((3, 3, cin, ca), lambda i: (0, 0, 0, 0)),
                pl.BlockSpec((1, ca), lambda i: (0, 0)),
                pl.BlockSpec((3, 3, ca, cb), lambda i: (0, 0, 0, 0)),
                pl.BlockSpec((1, cb), lambda i: (0, 0)),
            ],
            out_specs=pl.BlockSpec((1, h, w, cb), lambda i: (i, 0, 0, 0)),
            scratch_shapes=[pltpu.VMEM((h + 2, w8 + 2, ca), jnp.float32)],
        ),
        compiler_params=pltpu.CompilerParams(
            dimension_semantics=("parallel",)),
    )(xp, wa, ba, wb, bb)
    return out


# ---------------------------------------------------------------------------
# Kernel 3: ConvTranspose2d(k=4, stride=2, padding=1) via sub-pixel parities.
# Output parities go to a leading axis; one transpose+reshape interleaves them
# (no zeros-init / strided scatter stores in HBM).
# ---------------------------------------------------------------------------
def _deconv_kernel(x_ref, w_ref, b_ref, o_ref, *, h, w_real, w8, apply_act):
    # x_ref: (1, H+2, W8+2, Cin); w_ref: (4, 4, Cin, Cout) = [2a+b, 2ty+tx]
    # o_ref: (1, 4, H, W, Cout)   parity (a, b) stored at index 2a+b
    cin = x_ref.shape[-1]
    cout = w_ref.shape[-1]
    for a in range(2):
        for b in range(2):
            acc = jnp.zeros((h * w8, cout), jnp.float32)
            for ty in range(2):
                for tx in range(2):
                    lhs = x_ref[0, a + ty:a + ty + h,
                                b + tx:b + tx + w8, :].reshape(h * w8, cin)
                    acc = acc + jnp.dot(lhs, w_ref[2 * a + b, 2 * ty + tx],
                                        preferred_element_type=jnp.float32)
            y = acc + b_ref[...]
            if apply_act:
                y = _leaky(y)
            y = y.reshape(h, w8, cout)[:, :w_real, :]
            o_ref[0, 2 * a + b] = y.astype(o_ref.dtype)


def conv_transpose_4x4_s2(x, p, apply_act):
    x = x.astype(jnp.bfloat16)
    n, h, w, cin = x.shape
    wt, bias = p["w"], p["b"]
    cout = wt.shape[-1]
    w8 = _round_up(w, 8)
    xp = jnp.pad(x, ((0, 0), (1, 1), (1, w8 - w + 1), (0, 0)))
    kern = functools.partial(_deconv_kernel, h=h, w_real=w, w8=w8,
                             apply_act=apply_act)
    out = pl.pallas_call(
        kern,
        out_shape=jax.ShapeDtypeStruct((n, 4, h, w, cout), jnp.bfloat16),
        grid_spec=pltpu.PrefetchScalarGridSpec(
            num_scalar_prefetch=0,
            grid=(n,),
            in_specs=[
                pl.BlockSpec((1, h + 2, w8 + 2, cin), lambda i: (i, 0, 0, 0)),
                pl.BlockSpec((4, 4, cin, cout), lambda i: (0, 0, 0, 0)),
                pl.BlockSpec((1, cout), lambda i: (0, 0)),
            ],
            out_specs=pl.BlockSpec((1, 4, h, w, cout),
                                   lambda i: (i, 0, 0, 0, 0)),
        ),
        compiler_params=pltpu.CompilerParams(
            dimension_semantics=("parallel",)),
    )(xp, wt, bias)
    # (N, [a,b], H, W, C) -> (N, H, 2, W, 2, C) -> (N, 2H, 2W, C)
    out = out.reshape(n, 2, 2, h, w, cout)
    out = jnp.transpose(out, (0, 3, 1, 4, 2, 5)).reshape(n, 2 * h, 2 * w, cout)
    return out


# ---------------------------------------------------------------------------
# One-time weight packing (torch layouts -> kernel layouts, bf16)
# ---------------------------------------------------------------------------
def _pack_convrelu2(q):
    w1, b1 = q["c1"]["w"], q["c1"]["b"]          # (C1, Cin, k, 1)
    w2, b2 = q["c2"]["w"], q["c2"]["b"]          # (C2, C1, 1, k)
    return {
        "w1": jnp.transpose(w1[:, :, :, 0], (2, 1, 0)).astype(jnp.bfloat16),
        "b1": b1.reshape(1, -1).astype(jnp.float32),
        "w2": jnp.transpose(w2[:, :, 0, :], (2, 1, 0)).astype(jnp.bfloat16),
        "b2": b2.reshape(1, -1).astype(jnp.float32),
    }


def _pack_conv3x3(q):
    return (jnp.transpose(q["w"], (2, 3, 1, 0)).astype(jnp.bfloat16),
            q["b"].reshape(1, -1).astype(jnp.float32))


def _pack_predict_flow(qa, qb):
    wa, ba = _pack_conv3x3(qa)
    wb, bb = _pack_conv3x3(qb)
    return {"wa": wa, "ba": ba, "wb": wb, "bb": bb}


def _pack_deconv(q):
    w, b = q["w"], q["b"]                        # (Cin, Cout, 4, 4)
    rows = []
    for a in (0, 1):
        for bb in (0, 1):
            taps = [w[:, :, 3 - a - 2 * ty, 3 - bb - 2 * tx]
                    for ty in (0, 1) for tx in (0, 1)]
            rows.append(jnp.stack(taps, axis=0))        # (4, Cin, Cout)
    wp = jnp.stack(rows, axis=0)                         # (4, 4, Cin, Cout)
    return {"w": wp.astype(jnp.bfloat16),
            "b": b.reshape(1, -1).astype(jnp.float32)}


def pack_params(p):
    P = {}
    for name in ["conv1", "conv2", "conv2_1", "conv3", "conv3_1",
                 "conv4", "conv4_1", "conv5", "conv5_1"]:
        P[name] = _pack_convrelu2(p[name])
    P["flow1"] = _pack_predict_flow(p["flow1_a"], p["flow1_b"])
    P["flow2"] = _pack_predict_flow(p["flow2_a"], p["flow2_b"])
    for name in ["flow1_upconv", "upconv1", "upconv2", "upconv3"]:
        P[name] = _pack_deconv(p[name])
    return P


# ---------------------------------------------------------------------------
# Deterministic parameter construction (matches FlowBlock.__init__ shapes,
# use_prev_predictions=False branch); torch weight layouts, float32.
# ---------------------------------------------------------------------------
def init_params(key):
    keys = iter(jax.random.split(key, 64))

    def conv(cout, cin, kh, kw):
        std = (2.0 / (cin * kh * kw)) ** 0.5
        return {"w": std * jax.random.normal(next(keys), (cout, cin, kh, kw),
                                             jnp.float32),
                "b": 0.01 * jax.random.normal(next(keys), (cout,), jnp.float32)}

    def convT(cin, cout, kh, kw):
        std = (2.0 / (cin * kh * kw)) ** 0.5
        return {"w": std * jax.random.normal(next(keys), (cin, cout, kh, kw),
                                             jnp.float32),
                "b": 0.01 * jax.random.normal(next(keys), (cout,), jnp.float32)}

    def cr2(cin, c1, c2, k):
        return {"c1": conv(c1, cin, k, 1), "c2": conv(c2, c1, 1, k)}

    p = {}
    p["conv1"] = cr2(6, 32, 32, 9)
    p["conv2"] = cr2(32, 64, 64, 7)
    p["conv2_1"] = cr2(64, 64, 64, 3)
    p["conv3"] = cr2(64, 128, 128, 5)
    p["conv3_1"] = cr2(128, 128, 128, 3)
    p["conv4"] = cr2(128, 256, 256, 5)
    p["conv4_1"] = cr2(256, 256, 256, 3)
    p["conv5"] = cr2(256, 512, 512, 5)
    p["conv5_1"] = cr2(512, 512, 512, 3)
    p["flow1_a"] = conv(24, 512, 3, 3)
    p["flow1_b"] = conv(4, 24, 3, 3)
    p["flow1_upconv"] = convT(4, 2, 4, 4)
    p["upconv1"] = convT(512, 256, 4, 4)
    p["upconv2"] = convT(514, 128, 4, 4)
    p["upconv3"] = convT(256, 64, 4, 4)
    p["flow2_a"] = conv(24, 128, 3, 3)
    p["flow2_b"] = conv(4, 24, 3, 3)
    return p


# ---------------------------------------------------------------------------
# FlowBlock forward (prev_predictions=None path), all conv work in Pallas.
# ---------------------------------------------------------------------------
def flow_block_forward(P, image_pair_nchw):
    x = jnp.transpose(image_pair_nchw, (0, 2, 3, 1)).astype(jnp.bfloat16)

    conv1 = convrelu2(x, P["conv1"], 9, 2)
    conv2 = convrelu2(conv1, P["conv2"], 7, 2)
    conv2_1 = convrelu2(conv2, P["conv2_1"], 3, 1)
    conv3 = convrelu2(conv2_1, P["conv3"], 5, 2)
    conv3_1 = convrelu2(conv3, P["conv3_1"], 3, 1)
    conv4 = convrelu2(conv3_1, P["conv4"], 5, 2)
    conv4_1 = convrelu2(conv4, P["conv4_1"], 3, 1)
    conv5 = convrelu2(conv4_1, P["conv5"], 5, 2)
    conv5_1 = convrelu2(conv5, P["conv5_1"], 3, 1)

    upconv1 = conv_transpose_4x4_s2(conv5_1, P["upconv1"], apply_act=True)
    flow1 = predict_flow(conv5_1, P["flow1"])
    flow1_up = conv_transpose_4x4_s2(flow1, P["flow1_upconv"], apply_act=False)

    upconv2 = conv_transpose_4x4_s2(
        jnp.concatenate([upconv1, conv4_1, flow1_up], axis=-1),
        P["upconv2"], apply_act=True)
    upconv3 = conv_transpose_4x4_s2(
        jnp.concatenate([upconv2, conv3_1], axis=-1),
        P["upconv3"], apply_act=True)
    flow2 = predict_flow(jnp.concatenate([upconv3, conv2_1], axis=-1),
                         P["flow2"])
    return jnp.transpose(flow2.astype(jnp.float32), (0, 3, 1, 2))


# ---------------------------------------------------------------------------
# f32 references (pure jax/lax, torch-layout weights) for numerical checks
# ---------------------------------------------------------------------------
def _conv_ref(x, w, b, stride, padding):
    rhs = jnp.transpose(w, (2, 3, 1, 0))        # HWIO
    y = lax.conv_general_dilated(
        x, rhs, window_strides=stride,
        padding=((padding[0], padding[0]), (padding[1], padding[1])),
        dimension_numbers=("NHWC", "HWIO", "NHWC"),
        precision=lax.Precision.HIGHEST)
    return y + b


def _convrelu2_ref(x, q, k, stride):
    y = _leaky(_conv_ref(x, q["c1"]["w"], q["c1"]["b"], (stride, 1), (k // 2, 0)))
    return _leaky(_conv_ref(y, q["c2"]["w"], q["c2"]["b"], (1, stride), (0, k // 2)))


def _predict_flow_ref(x, qa, qb):
    y = _leaky(_conv_ref(x, qa["w"], qa["b"], (1, 1), (1, 1)))
    return _conv_ref(y, qb["w"], qb["b"], (1, 1), (1, 1))


def _deconv_ref(x, q):
    # PyTorch ConvTranspose2d(k=4, stride=2, padding=1), from its definition:
    # out[2i-1+ky, 2j-1+kx] += x[i, j] . w[:, :, ky, kx]
    w, b = q["w"], q["b"]
    n, h, wd, _ = x.shape
    cout = w.shape[1]
    out = jnp.zeros((n, 2 * h + 2, 2 * wd + 2, cout), jnp.float32)
    for ky in range(4):
        for kx in range(4):
            c = jnp.einsum("nhwc,cd->nhwd", x, w[:, :, ky, kx],
                           precision=lax.Precision.HIGHEST)
            out = out.at[:, ky:ky + 2 * h:2, kx:kx + 2 * wd:2, :].add(c)
    return out[:, 1:1 + 2 * h, 1:1 + 2 * wd, :] + b


def flow_block_ref(p, image_pair_nchw):
    x = jnp.transpose(image_pair_nchw, (0, 2, 3, 1)).astype(jnp.float32)
    c1 = _convrelu2_ref(x, p["conv1"], 9, 2)
    c2 = _convrelu2_ref(c1, p["conv2"], 7, 2)
    c2_1 = _convrelu2_ref(c2, p["conv2_1"], 3, 1)
    c3 = _convrelu2_ref(c2_1, p["conv3"], 5, 2)
    c3_1 = _convrelu2_ref(c3, p["conv3_1"], 3, 1)
    c4 = _convrelu2_ref(c3_1, p["conv4"], 5, 2)
    c4_1 = _convrelu2_ref(c4, p["conv4_1"], 3, 1)
    c5 = _convrelu2_ref(c4_1, p["conv5"], 5, 2)
    c5_1 = _convrelu2_ref(c5, p["conv5_1"], 3, 1)
    up1 = _leaky(_deconv_ref(c5_1, p["upconv1"]))
    f1 = _predict_flow_ref(c5_1, p["flow1_a"], p["flow1_b"])
    f1_up = _deconv_ref(f1, p["flow1_upconv"])
    up2 = _leaky(_deconv_ref(jnp.concatenate([up1, c4_1, f1_up], -1),
                             p["upconv2"]))
    up3 = _leaky(_deconv_ref(jnp.concatenate([up2, c3_1], -1), p["upconv3"]))
    f2 = _predict_flow_ref(jnp.concatenate([up3, c2_1], -1),
                           p["flow2_a"], p["flow2_b"])
    return jnp.transpose(f2, (0, 3, 1, 2))


if __name__ == "__main__":
    root = jax.random.PRNGKey(0)
    pkey, xkey, tkey = jax.random.split(root, 3)

    # -------- unit checks of each fused kernel vs f32 references -----------
    def _check(got, ref, tag):
        got = jnp.asarray(got, jnp.float32)
        assert got.shape == ref.shape, (tag, got.shape, ref.shape)
        err = float(jnp.max(jnp.abs(got - ref)))
        bound = 0.05 * float(jnp.max(jnp.abs(ref))) + 0.05
        assert err < bound, (tag, err, bound)

    ks = jax.random.split(tkey, 12)
    # separable conv-relu pair, stride 2 (hardest indexing path)
    q = {"c1": {"w": 0.2 * jax.random.normal(ks[0], (16, 8, 5, 1), jnp.float32),
                "b": 0.1 * jax.random.normal(ks[1], (16,), jnp.float32)},
         "c2": {"w": 0.2 * jax.random.normal(ks[2], (16, 16, 1, 5), jnp.float32),
                "b": 0.1 * jax.random.normal(ks[3], (16,), jnp.float32)}}
    xt = jax.random.normal(ks[4], (2, 8, 8, 8), jnp.float32)
    _check(convrelu2(xt, _pack_convrelu2(q), 5, 2),
           _convrelu2_ref(xt, q, 5, 2), "convrelu2")

    # predict_flow head (3x3 + leaky -> 3x3)
    qa = {"w": 0.2 * jax.random.normal(ks[5], (24, 16, 3, 3), jnp.float32),
          "b": 0.1 * jax.random.normal(ks[6], (24,), jnp.float32)}
    qb = {"w": 0.2 * jax.random.normal(ks[7], (4, 24, 3, 3), jnp.float32),
          "b": 0.1 * jax.random.normal(ks[8], (4,), jnp.float32)}
    xt = jax.random.normal(ks[9], (2, 8, 8, 16), jnp.float32)
    _check(predict_flow(xt, _pack_predict_flow(qa, qb)),
           _predict_flow_ref(xt, qa, qb), "predict_flow")

    # ConvTranspose2d(4, 4, stride=2, padding=1) sub-pixel decomposition
    qt = {"w": 0.2 * jax.random.normal(ks[10], (8, 16, 4, 4), jnp.float32),
          "b": 0.1 * jax.random.normal(ks[11], (16,), jnp.float32)}
    xt = jax.random.normal(ks[4], (2, 4, 4, 8), jnp.float32)
    _check(conv_transpose_4x4_s2(xt, _pack_deconv(qt), apply_act=False),
           _deconv_ref(xt, qt), "conv_transpose")

    # -------- full FlowBlock forward (prev_predictions=None path) ----------
    params = init_params(pkey)          # torch-layout f32 parameters
    P = pack_params(params)             # one-time packing -> bf16 kernels
    image_pair = jax.random.normal(xkey, (2, 6, 32, 32), jnp.float32)

    out = jax.jit(flow_block_forward)(P, image_pair)
    out = jax.block_until_ready(out)
    assert out.shape == (2, 4, 8, 8), out.shape
    assert bool(jnp.all(jnp.isfinite(out)))

    ref = jax.jit(flow_block_ref)(params, image_pair)
    rel = float(jnp.max(jnp.abs(out - ref))) / (float(jnp.max(jnp.abs(ref))) + 1e-6)
    assert rel < 0.2, rel
    print("KERNEL_OK")
</pallas_src>

<mosaic_0001>
module attributes {stable_mosaic.version = 11 : i64} {
  func.func @_convrelu2_kernel(%arg0: i32, %arg1: memref<1x6x2x8x8xbf16, #tpu.memory_space<vmem>>, %arg2: memref<5x8x16xbf16, #tpu.memory_space<vmem>>, %arg3: memref<1x16xf32, #tpu.memory_space<vmem>>, %arg4: memref<5x16x16xbf16, #tpu.memory_space<vmem>>, %arg5: memref<1x16xf32, #tpu.memory_space<vmem>>, %arg6: memref<1x4x8x16xbf16, #tpu.memory_space<vmem>>, %arg7: memref<4x12x16xf32, #tpu.memory_space<vmem>>, %arg8: memref<32x16xf32, #tpu.memory_space<vmem>>, %arg9: memref<32x16xf32, #tpu.memory_space<vmem>>) attributes {dimension_semantics = [#tpu.dimension_semantics<parallel>], iteration_bounds = array<i64: 2>, scalar_prefetch = 0 : i64, scratch_operands = 3 : i64, tpu.core_type = #tpu.core_type<tc>, window_params = [{transform_indices = @transform_0, window_bounds = array<i64: 1, 6, 2, 8, 8>}, {pipeline_mode = #tpu.pipeline_mode<synchronous>, transform_indices = @transform_1, window_bounds = array<i64: 5, 8, 16>}, {pipeline_mode = #tpu.pipeline_mode<synchronous>, transform_indices = @transform_2, window_bounds = array<i64: 1, 16>}, {pipeline_mode = #tpu.pipeline_mode<synchronous>, transform_indices = @transform_3, window_bounds = array<i64: 5, 16, 16>}, {pipeline_mode = #tpu.pipeline_mode<synchronous>, transform_indices = @transform_4, window_bounds = array<i64: 1, 16>}, {transform_indices = @transform_5, window_bounds = array<i64: 1, 4, 8, 16>}]} {
    %cst = arith.constant 0.000000e+00 : f32
    %0 = vector.broadcast %cst : f32 to vector<32x16xf32>
    %c0 = arith.constant 0 : index
    %c0_0 = arith.constant 0 : index
    %1 = vector.load %arg8[%c0, %c0_0] : memref<32x16xf32, #tpu.memory_space<vmem>>, vector<32x16xf32>
    tpu.vector_store %arg8[%c0, %c0_0], %0 {strides = array<i32>} : memref<32x16xf32, #tpu.memory_space<vmem>>, vector<32x16xf32>,
    %c0_1 = arith.constant 0 : index
    %c0_2 = arith.constant 0 : index
    %c0_3 = arith.constant 0 : index
    %c0_4 = arith.constant 0 : index
    %c0_5 = arith.constant 0 : index
    %2 = vector.load %arg1[%c0_1, %c0_2, %c0_3, %c0_4, %c0_5] : memref<1x6x2x8x8xbf16, #tpu.memory_space<vmem>>, vector<1x4x1x8x8xbf16>
    %3 = vector.shape_cast %2 : vector<1x4x1x8x8xbf16> to vector<4x8x8xbf16>
    %4 = vector.shape_cast %3 : vector<4x8x8xbf16> to vector<32x8xbf16>
    %c0_6 = arith.constant 0 : index
    %c0_7 = arith.constant 0 : index
    %5 = vector.load %arg8[%c0_6, %c0_7] : memref<32x16xf32, #tpu.memory_space<vmem>>, vector<32x16xf32>
    %c0_8 = arith.constant 0 : index
    %c0_9 = arith.constant 0 : index
    %c0_10 = arith.constant 0 : index
    %6 = vector.load %arg2[%c0_8, %c0_9, %c0_10] : memref<5x8x16xbf16, #tpu.memory_space<vmem>>, vector<1x8x16xbf16>
    %7 = vector.shape_cast %6 : vector<1x8x16xbf16> to vector<8x16xbf16>
    %cst_11 = arith.constant dense<0.000000e+00> : vector<32x16xf32>
    %8 = tpu.matmul %4, %7, %cst_11 {dimension_numbers = #tpu.dot_dimension_numbers<[1], [0], [0], [1], [0, 0, 1, 1], [], []>} : vector<32x8xbf16>, vector<8x16xbf16>, vector<32x16xf32> -> vector<32x16xf32>
    %9 = arith.addf %5, %8 : vector<32x16xf32>
    %c0_12 = arith.constant 0 : index
    %c0_13 = arith.constant 0 : index
    %10 = vector.load %arg8[%c0_12, %c0_13] : memref<32x16xf32, #tpu.memory_space<vmem>>, vector<32x16xf32>
    tpu.vector_store %arg8[%c0_12, %c0_13], %9 {strides = array<i32>} : memref<32x16xf32, #tpu.memory_space<vmem>>, vector<32x16xf32>,
    %c0_14 = arith.constant 0 : index
    %c0_15 = arith.constant 0 : index
    %c1 = arith.constant 1 : index
    %c0_16 = arith.constant 0 : index
    %c0_17 = arith.constant 0 : index
    %11 = vector.load %arg1[%c0_14, %c0_15, %c1, %c0_16, %c0_17] : memref<1x6x2x8x8xbf16, #tpu.memory_space<vmem>>, vector<1x4x1x8x8xbf16>
    %12 = vector.shape_cast %11 : vector<1x4x1x8x8xbf16> to vector<4x8x8xbf16>
    %13 = vector.shape_cast %12 : vector<4x8x8xbf16> to vector<32x8xbf16>
    %c0_18 = arith.constant 0 : index
    %c0_19 = arith.constant 0 : index
    %14 = vector.load %arg8[%c0_18, %c0_19] : memref<32x16xf32, #tpu.memory_space<vmem>>, vector<32x16xf32>
    %c1_20 = arith.constant 1 : index
    %c0_21 = arith.constant 0 : index
    %c0_22 = arith.constant 0 : index
    %15 = vector.load %arg2[%c1_20, %c0_21, %c0_22] : memref<5x8x16xbf16, #tpu.memory_space<vmem>>, vector<1x8x16xbf16>
    %16 = vector.shape_cast %15 : vector<1x8x16xbf16> to vector<8x16xbf16>
    %cst_23 = arith.constant dense<0.000000e+00> : vector<32x16xf32>
    %17 = tpu.matmul %13, %16, %cst_23 {dimension_numbers = #tpu.dot_dimension_numbers<[1], [0], [0], [1], [0, 0, 1, 1], [], []>} : vector<32x8xbf16>, vector<8x16xbf16>, vector<32x16xf32> -> vector<32x16xf32>
    %18 = arith.addf %14, %17 : vector<32x16xf32>
    %c0_24 = arith.constant 0 : index
    %c0_25 = arith.constant 0 : index
    %19 = vector.load %arg8[%c0_24, %c0_25] : memref<32x16xf32, #tpu.memory_space<vmem>>, vector<32x16xf32>
    tpu.vector_store %arg8[%c0_24, %c0_25], %18 {strides = array<i32>} : memref<32x16xf32, #tpu.memory_space<vmem>>, vector<32x16xf32>,
    %c0_26 = arith.constant 0 : index
    %c1_27 = arith.constant 1 : index
    %c0_28 = arith.constant 0 : index
    %c0_29 = arith.constant 0 : index
    %c0_30 = arith.constant 0 : index
    %20 = vector.load %arg1[%c0_26, %c1_27, %c0_28, %c0_29, %c0_30] : memref<1x6x2x8x8xbf16, #tpu.memory_space<vmem>>, vector<1x4x1x8x8xbf16>
    %21 = vector.shape_cast %20 : vector<1x4x1x8x8xbf16> to vector<4x8x8xbf16>
    %22 = vector.shape_cast %21 : vector<4x8x8xbf16> to vector<32x8xbf16>
    %c0_31 = arith.constant 0 : index
    %c0_32 = arith.constant 0 : index
    %23 = vector.load %arg8[%c0_31, %c0_32] : memref<32x16xf32, #tpu.memory_space<vmem>>, vector<32x16xf32>
    %c2 = arith.constant 2 : index
    %c0_33 = arith.constant 0 : index
    %c0_34 = arith.constant 0 : index
    %24 = vector.load %arg2[%c2, %c0_33, %c0_34] : memref<5x8x16xbf16, #tpu.memory_space<vmem>>, vector<1x8x16xbf16>
    %25 = vector.shape_cast %24 : vector<1x8x16xbf16> to vector<8x16xbf16>
    %cst_35 = arith.constant dense<0.000000e+00> : vector<32x16xf32>
    %26 = tpu.matmul %22, %25, %cst_35 {dimension_numbers = #tpu.dot_dimension_numbers<[1], [0], [0], [1], [0, 0, 1, 1], [], []>} : vector<32x8xbf16>, vector<8x16xbf16>, vector<32x16xf32> -> vector<32x16xf32>
    %27 = arith.addf %23, %26 : vector<32x16xf32>
    %c0_36 = arith.constant 0 : index
    %c0_37 = arith.constant 0 : index
    %28 = vector.load %arg8[%c0_36, %c0_37] : memref<32x16xf32, #tpu.memory_space<vmem>>, vector<32x16xf32>
    tpu.vector_store %arg8[%c0_36, %c0_37], %27 {strides = array<i32>} : memref<32x16xf32, #tpu.memory_space<vmem>>, vector<32x16xf32>,
    %c0_38 = arith.constant 0 : index
    %c1_39 = arith.constant 1 : index
    %c1_40 = arith.constant 1 : index
    %c0_41 = arith.constant 0 : index
    %c0_42 = arith.constant 0 : index
    %29 = vector.load %arg1[%c0_38, %c1_39, %c1_40, %c0_41, %c0_42] : memref<1x6x2x8x8xbf16, #tpu.memory_space<vmem>>, vector<1x4x1x8x8xbf16>
    %30 = vector.shape_cast %29 : vector<1x4x1x8x8xbf16> to vector<4x8x8xbf16>
    %31 = vector.shape_cast %30 : vector<4x8x8xbf16> to vector<32x8xbf16>
    %c0_43 = arith.constant 0 : index
    %c0_44 = arith.constant 0 : index
    %32 = vector.load %arg8[%c0_43, %c0_44] : memref<32x16xf32, #tpu.memory_space<vmem>>, vector<32x16xf32>
    %c3 = arith.constant 3 : index
    %c0_45 = arith.constant 0 : index
    %c0_46 = arith.constant 0 : index
    %33 = vector.load %arg2[%c3, %c0_45, %c0_46] : memref<5x8x16xbf16, #tpu.memory_space<vmem>>, vector<1x8x16xbf16>
    %34 = vector.shape_cast %33 : vector<1x8x16xbf16> to vector<8x16xbf16>
    %cst_47 = arith.constant dense<0.000000e+00> : vector<32x16xf32>
    %35 = tpu.matmul %31, %34, %cst_47 {dimension_numbers = #tpu.dot_dimension_numbers<[1], [0], [0], [1], [0, 0, 1, 1], [], []>} : vector<32x8xbf16>, vector<8x16xbf16>, vector<32x16xf32> -> vector<32x16xf32>
    %36 = arith.addf %32, %35 : vector<32x16xf32>
    %c0_48 = arith.constant 0 : index
    %c0_49 = arith.constant 0 : index
    %37 = vector.load %arg8[%c0_48, %c0_49] : memref<32x16xf32, #tpu.memory_space<vmem>>, vector<32x16xf32>
    tpu.vector_store %arg8[%c0_48, %c0_49], %36 {strides = array<i32>} : memref<32x16xf32, #tpu.memory_space<vmem>>, vector<32x16xf32>,
    %c0_50 = arith.constant 0 : index
    %c2_51 = arith.constant 2 : index
    %c0_52 = arith.constant 0 : index
    %c0_53 = arith.constant 0 : index
    %c0_54 = arith.constant 0 : index
    %38 = vector.load %arg1[%c0_50, %c2_51, %c0_52, %c0_53, %c0_54] : memref<1x6x2x8x8xbf16, #tpu.memory_space<vmem>>, vector<1x4x1x8x8xbf16>
    %39 = vector.shape_cast %38 : vector<1x4x1x8x8xbf16> to vector<4x8x8xbf16>
    %40 = vector.shape_cast %39 : vector<4x8x8xbf16> to vector<32x8xbf16>
    %c0_55 = arith.constant 0 : index
    %c0_56 = arith.constant 0 : index
    %41 = vector.load %arg8[%c0_55, %c0_56] : memref<32x16xf32, #tpu.memory_space<vmem>>, vector<32x16xf32>
    %c4 = arith.constant 4 : index
    %c0_57 = arith.constant 0 : index
    %c0_58 = arith.constant 0 : index
    %42 = vector.load %arg2[%c4, %c0_57, %c0_58] : memref<5x8x16xbf16, #tpu.memory_space<vmem>>, vector<1x8x16xbf16>
    %43 = vector.shape_cast %42 : vector<1x8x16xbf16> to vector<8x16xbf16>
    %cst_59 = arith.constant dense<0.000000e+00> : vector<32x16xf32>
    %44 = tpu.matmul %40, %43, %cst_59 {dimension_numbers = #tpu.dot_dimension_numbers<[1], [0], [0], [1], [0, 0, 1, 1], [], []>} : vector<32x8xbf16>, vector<8x16xbf16>, vector<32x16xf32> -> vector<32x16xf32>
    %45 = arith.addf %41, %44 : vector<32x16xf32>
    %c0_60 = arith.constant 0 : index
    %c0_61 = arith.constant 0 : index
    %46 = vector.load %arg8[%c0_60, %c0_61] : memref<32x16xf32, #tpu.memory_space<vmem>>, vector<32x16xf32>
    tpu.vector_store %arg8[%c0_60, %c0_61], %45 {strides = array<i32>} : memref<32x16xf32, #tpu.memory_space<vmem>>, vector<32x16xf32>,
    %c0_62 = arith.constant 0 : index
    %c0_63 = arith.constant 0 : index
    %47 = vector.load %arg8[%c0_62, %c0_63] : memref<32x16xf32, #tpu.memory_space<vmem>>, vector<32x16xf32>
    %c0_64 = arith.constant 0 : index
    %c0_65 = arith.constant 0 : index
    %48 = vector.load %arg3[%c0_64, %c0_65] : memref<1x16xf32, #tpu.memory_space<vmem>>, vector<1x16xf32>
    %49 = vector.broadcast %48 : vector<1x16xf32> to vector<32x16xf32>
    %50 = arith.addf %47, %49 : vector<32x16xf32>
    %cst_66 = arith.constant 0.000000e+00 : f32
    %51 = vector.broadcast %cst_66 : f32 to vector<32x16xf32>
    %52 = arith.cmpf oge, %50, %51 : vector<32x16xf32>
    %cst_67 = arith.constant 1.000000e-01 : f32
    %53 = vector.broadcast %cst_67 : f32 to vector<32x16xf32>
    %54 = arith.mulf %53, %50 : vector<32x16xf32>
    %55 = arith.select %52, %50, %54 : vector<32x16xi1>, vector<32x16xf32>
    %56 = vector.shape_cast %55 : vector<32x16xf32> to vector<4x8x16xf32>
    %cst_68 = arith.constant 0.000000e+00 : f32
    %57 = vector.broadcast %cst_68 : f32 to vector<4x12x16xf32>
    %c0_69 = arith.constant 0 : index
    %c0_70 = arith.constant 0 : index
    %c0_71 = arith.constant 0 : index
    %58 = vector.load %arg7[%c0_69, %c0_70, %c0_71] : memref<4x12x16xf32, #tpu.memory_space<vmem>>, vector<4x12x16xf32>
    tpu.vector_store %arg7[%c0_69, %c0_70, %c0_71], %57 {strides = array<i32>} : memref<4x12x16xf32, #tpu.memory_space<vmem>>, vector<4x12x16xf32>,
    %c0_72 = arith.constant 0 : index
    %c2_73 = arith.constant 2 : index
    %c0_74 = arith.constant 0 : index
    %59 = vector.load %arg7[%c0_72, %c2_73, %c0_74] : memref<4x12x16xf32, #tpu.memory_space<vmem>>, vector<4x8x16xf32>
    tpu.vector_store %arg7[%c0_72, %c2_73, %c0_74], %56 {strides = array<i32>} : memref<4x12x16xf32, #tpu.memory_space<vmem>>, vector<4x8x16xf32>,
    %cst_75 = arith.constant 0.000000e+00 : f32
    %60 = vector.broadcast %cst_75 : f32 to vector<32x16xf32>
    %c0_76 = arith.constant 0 : index
    %c0_77 = arith.constant 0 : index
    %61 = vector.load %arg9[%c0_76, %c0_77] : memref<32x16xf32, #tpu.memory_space<vmem>>, vector<32x16xf32>
    tpu.vector_store %arg9[%c0_76, %c0_77], %60 {strides = array<i32>} : memref<32x16xf32, #tpu.memory_space<vmem>>, vector<32x16xf32>,
    %c0_78 = arith.constant 0 : index
    %c0_79 = arith.constant 0 : index
    %c0_80 = arith.constant 0 : index
    %62 = vector.load %arg7[%c0_78, %c0_79, %c0_80] : memref<4x12x16xf32, #tpu.memory_space<vmem>>, vector<4x8x16xf32>
    %63 = arith.truncf %62 : vector<4x8x16xf32> to vector<4x8x16xbf16>
    %64 = vector.shape_cast %63 : vector<4x8x16xbf16> to vector<32x16xbf16>
    %c0_81 = arith.constant 0 : index
    %c0_82 = arith.constant 0 : index
    %65 = vector.load %arg9[%c0_81, %c0_82] : memref<32x16xf32, #tpu.memory_space<vmem>>, vector<32x16xf32>
    %c0_83 = arith.constant 0 : index
    %c0_84 = arith.constant 0 : index
    %c0_85 = arith.constant 0 : index
    %66 = vector.load %arg4[%c0_83, %c0_84, %c0_85] : memref<5x16x16xbf16, #tpu.memory_space<vmem>>, vector<1x16x16xbf16>
    %67 = vector.shape_cast %66 : vector<1x16x16xbf16> to vector<16x16xbf16>
    %cst_86 = arith.constant dense<0.000000e+00> : vector<32x16xf32>
    %68 = tpu.matmul %64, %67, %cst_86 {dimension_numbers = #tpu.dot_dimension_numbers<[1], [0], [0], [1], [0, 0, 1, 1], [], []>} : vector<32x16xbf16>, vector<16x16xbf16>, vector<32x16xf32> -> vector<32x16xf32>
    %69 = arith.addf %65, %68 : vector<32x16xf32>
    %c0_87 = arith.constant 0 : index
    %c0_88 = arith.constant 0 : index
    %70 = vector.load %arg9[%c0_87, %c0_88] : memref<32x16xf32, #tpu.memory_space<vmem>>, vector<32x16xf32>
    tpu.vector_store %arg9[%c0_87, %c0_88], %69 {strides = array<i32>} : memref<32x16xf32, #tpu.memory_space<vmem>>, vector<32x16xf32>,
    %c0_89 = arith.constant 0 : index
    %c1_90 = arith.constant 1 : index
    %c0_91 = arith.constant 0 : index
    %71 = vector.load %arg7[%c0_89, %c1_90, %c0_91] : memref<4x12x16xf32, #tpu.memory_space<vmem>>, vector<4x8x16xf32>
    %72 = arith.truncf %71 : vector<4x8x16xf32> to vector<4x8x16xbf16>
    %73 = vector.shape_cast %72 : vector<4x8x16xbf16> to vector<32x16xbf16>
    %c0_92 = arith.constant 0 : index
    %c0_93 = arith.constant 0 : index
    %74 = vector.load %arg9[%c0_92, %c0_93] : memref<32x16xf32, #tpu.memory_space<vmem>>, vector<32x16xf32>
    %c1_94 = arith.constant 1 : index
    %c0_95 = arith.constant 0 : index
    %c0_96 = arith.constant 0 : index
    %75 = vector.load %arg4[%c1_94, %c0_95, %c0_96] : memref<5x16x16xbf16, #tpu.memory_space<vmem>>, vector<1x16x16xbf16>
    %76 = vector.shape_cast %75 : vector<1x16x16xbf16> to vector<16x16xbf16>
    %cst_97 = arith.constant dense<0.000000e+00> : vector<32x16xf32>
    %77 = tpu.matmul %73, %76, %cst_97 {dimension_numbers = #tpu.dot_dimension_numbers<[1], [0], [0], [1], [0, 0, 1, 1], [], []>} : vector<32x16xbf16>, vector<16x16xbf16>, vector<32x16xf32> -> vector<32x16xf32>
    %78 = arith.addf %74, %77 : vector<32x16xf32>
    %c0_98 = arith.constant 0 : index
    %c0_99 = arith.constant 0 : index
    %79 = vector.load %arg9[%c0_98, %c0_99] : memref<32x16xf32, #tpu.memory_space<vmem>>, vector<32x16xf32>
    tpu.vector_store %arg9[%c0_98, %c0_99], %78 {strides = array<i32>} : memref<32x16xf32, #tpu.memory_space<vmem>>, vector<32x16xf32>,
    %c0_100 = arith.constant 0 : index
    %c2_101 = arith.constant 2 : index
    %c0_102 = arith.constant 0 : index
    %80 = vector.load %arg7[%c0_100, %c2_101, %c0_102] : memref<4x12x16xf32, #tpu.memory_space<vmem>>, vector<4x8x16xf32>
    %81 = arith.truncf %80 : vector<4x8x16xf32> to vector<4x8x16xbf16>
    %82 = vector.shape_cast %81 : vector<4x8x16xbf16> to vector<32x16xbf16>
    %c0_103 = arith.constant 0 : index
    %c0_104 = arith.constant 0 : index
    %83 = vector.load %arg9[%c0_103, %c0_104] : memref<32x16xf32, #tpu.memory_space<vmem>>, vector<32x16xf32>
    %c2_105 = arith.constant 2 : index
    %c0_106 = arith.constant 0 : index
    %c0_107 = arith.constant 0 : index
    %84 = vector.load %arg4[%c2_105, %c0_106, %c0_107] : memref<5x16x16xbf16, #tpu.memory_space<vmem>>, vector<1x16x16xbf16>
    %85 = vector.shape_cast %84 : vector<1x16x16xbf16> to vector<16x16xbf16>
    %cst_108 = arith.constant dense<0.000000e+00> : vector<32x16xf32>
    %86 = tpu.matmul %82, %85, %cst_108 {dimension_numbers = #tpu.dot_dimension_numbers<[1], [0], [0], [1], [0, 0, 1, 1], [], []>} : vector<32x16xbf16>, vector<16x16xbf16>, vector<32x16xf32> -> vector<32x16xf32>
    %87 = arith.addf %83, %86 : vector<32x16xf32>
    %c0_109 = arith.constant 0 : index
    %c0_110 = arith.constant 0 : index
    %88 = vector.load %arg9[%c0_109, %c0_110] : memref<32x16xf32, #tpu.memory_space<vmem>>, vector<32x16xf32>
    tpu.vector_store %arg9[%c0_109, %c0_110], %87 {strides = array<i32>} : memref<32x16xf32, #tpu.memory_space<vmem>>, vector<32x16xf32>,
    %c0_111 = arith.constant 0 : index
    %c3_112 = arith.constant 3 : index
    %c0_113 = arith.constant 0 : index
    %89 = vector.load %arg7[%c0_111, %c3_112, %c0_113] : memref<4x12x16xf32, #tpu.memory_space<vmem>>, vector<4x8x16xf32>
    %90 = arith.truncf %89 : vector<4x8x16xf32> to vector<4x8x16xbf16>
    %91 = vector.shape_cast %90 : vector<4x8x16xbf16> to vector<32x16xbf16>
    %c0_114 = arith.constant 0 : index
    %c0_115 = arith.constant 0 : index
    %92 = vector.load %arg9[%c0_114, %c0_115] : memref<32x16xf32, #tpu.memory_space<vmem>>, vector<32x16xf32>
    %c3_116 = arith.constant 3 : index
    %c0_117 = arith.constant 0 : index
    %c0_118 = arith.constant 0 : index
    %93 = vector.load %arg4[%c3_116, %c0_117, %c0_118] : memref<5x16x16xbf16, #tpu.memory_space<vmem>>, vector<1x16x16xbf16>
    %94 = vector.shape_cast %93 : vector<1x16x16xbf16> to vector<16x16xbf16>
    %cst_119 = arith.constant dense<0.000000e+00> : vector<32x16xf32>
    %95 = tpu.matmul %91, %94, %cst_119 {dimension_numbers = #tpu.dot_dimension_numbers<[1], [0], [0], [1], [0, 0, 1, 1], [], []>} : vector<32x16xbf16>, vector<16x16xbf16>, vector<32x16xf32> -> vector<32x16xf32>
    %96 = arith.addf %92, %95 : vector<32x16xf32>
    %c0_120 = arith.constant 0 : index
    %c0_121 = arith.constant 0 : index
    %97 = vector.load %arg9[%c0_120, %c0_121] : memref<32x16xf32, #tpu.memory_space<vmem>>, vector<32x16xf32>
    tpu.vector_store %arg9[%c0_120, %c0_121], %96 {strides = array<i32>} : memref<32x16xf32, #tpu.memory_space<vmem>>, vector<32x16xf32>,
    %c0_122 = arith.constant 0 : index
    %c4_123 = arith.constant 4 : index
    %c0_124 = arith.constant 0 : index
    %98 = vector.load %arg7[%c0_122, %c4_123, %c0_124] : memref<4x12x16xf32, #tpu.memory_space<vmem>>, vector<4x8x16xf32>
    %99 = arith.truncf %98 : vector<4x8x16xf32> to vector<4x8x16xbf16>
    %100 = vector.shape_cast %99 : vector<4x8x16xbf16> to vector<32x16xbf16>
    %c0_125 = arith.constant 0 : index
    %c0_126 = arith.constant 0 : index
    %101 = vector.load %arg9[%c0_125, %c0_126] : memref<32x16xf32, #tpu.memory_space<vmem>>, vector<32x16xf32>
    %c4_127 = arith.constant 4 : index
    %c0_128 = arith.constant 0 : index
    %c0_129 = arith.constant 0 : index
    %102 = vector.load %arg4[%c4_127, %c0_128, %c0_129] : memref<5x16x16xbf16, #tpu.memory_space<vmem>>, vector<1x16x16xbf16>
    %103 = vector.shape_cast %102 : vector<1x16x16xbf16> to vector<16x16xbf16>
    %cst_130 = arith.constant dense<0.000000e+00> : vector<32x16xf32>
    %104 = tpu.matmul %100, %103, %cst_130 {dimension_numbers = #tpu.dot_dimension_numbers<[1], [0], [0], [1], [0, 0, 1, 1], [], []>} : vector<32x16xbf16>, vector<16x16xbf16>, vector<32x16xf32> -> vector<32x16xf32>
    %105 = arith.addf %101, %104 : vector<32x16xf32>
    %c0_131 = arith.constant 0 : index
    %c0_132 = arith.constant 0 : index
    %106 = vector.load %arg9[%c0_131, %c0_132] : memref<32x16xf32, #tpu.memory_space<vmem>>, vector<32x16xf32>
    tpu.vector_store %arg9[%c0_131, %c0_132], %105 {strides = array<i32>} : memref<32x16xf32, #tpu.memory_space<vmem>>, vector<32x16xf32>,
    %c0_133 = arith.constant 0 : index
    %c0_134 = arith.constant 0 : index
    %107 = vector.load %arg9[%c0_133, %c0_134] : memref<32x16xf32, #tpu.memory_space<vmem>>, vector<32x16xf32>
    %c0_135 = arith.constant 0 : index
    %c0_136 = arith.constant 0 : index
    %108 = vector.load %arg5[%c0_135, %c0_136] : memref<1x16xf32, #tpu.memory_space<vmem>>, vector<1x16xf32>
    %109 = vector.broadcast %108 : vector<1x16xf32> to vector<32x16xf32>
    %110 = arith.addf %107, %109 : vector<32x16xf32>
    %cst_137 = arith.constant 0.000000e+00 : f32
    %111 = vector.broadcast %cst_137 : f32 to vector<32x16xf32>
    %112 = arith.cmpf oge, %110, %111 : vector<32x16xf32>
    %cst_138 = arith.constant 1.000000e-01 : f32
    %113 = vector.broadcast %cst_138 : f32 to vector<32x16xf32>
    %114 = arith.mulf %113, %110 : vector<32x16xf32>
    %115 = arith.select %112, %110, %114 : vector<32x16xi1>, vector<32x16xf32>
    %116 = vector.shape_cast %115 : vector<32x16xf32> to vector<4x8x16xf32>
    %117 = arith.truncf %116 : vector<4x8x16xf32> to vector<4x8x16xbf16>
    %c0_139 = arith.constant 0 : index
    %c0_140 = arith.constant 0 : index
    %c0_141 = arith.constant 0 : index
    %c0_142 = arith.constant 0 : index
    %118 = vector.load %arg6[%c0_139, %c0_140, %c0_141, %c0_142] : memref<1x4x8x16xbf16, #tpu.memory_space<vmem>>, vector<1x4x8x16xbf16>
    %119 = vector.shape_cast %118 : vector<1x4x8x16xbf16> to vector<4x8x16xbf16>
    %120 = vector.shape_cast %117 : vector<4x8x16xbf16> to vector<1x4x8x16xbf16>
    tpu.vector_store %arg6[%c0_139, %c0_140, %c0_141, %c0_142], %120 {strides = array<i32>} : memref<1x4x8x16xbf16, #tpu.memory_space<vmem>>, vector<1x4x8x16xbf16>,
    return
  }
  func.func @transform_0(%arg0: i32) -> (i32, i32, i32, i32, i32) {
    %c0_i32 = arith.constant 0 : i32
    %c0_i32_0 = arith.constant 0 : i32
    %c0_i32_1 = arith.constant 0 : i32
    %c0_i32_2 = arith.constant 0 : i32
    %c0_i32_3 = arith.constant 0 : i32
    return %arg0, %c0_i32, %c0_i32_0, %c0_i32_1, %c0_i32_2 : i32, i32, i32, i32, i32
  }
  func.func @transform_1(%arg0: i32) -> (i32, i32, i32) {
    %c0_i32 = arith.constant 0 : i32
    %c0_i32_0 = arith.constant 0 : i32
    %c0_i32_1 = arith.constant 0 : i32
    %c0_i32_2 = arith.constant 0 : i32
    return %c0_i32, %c0_i32_0, %c0_i32_1 : i32, i32, i32
  }
  func.func @transform_2(%arg0: i32) -> (i32, i32) {
    %c0_i32 = arith.constant 0 : i32
    %c0_i32_0 = arith.constant 0 : i32
    %c0_i32_1 = arith.constant 0 : i32
    return %c0_i32, %c0_i32_0 : i32, i32
  }
  func.func @transform_3(%arg0: i32) -> (i32, i32, i32) {
    %c0_i32 = arith.constant 0 : i32
    %c0_i32_0 = arith.constant 0 : i32
    %c0_i32_1 = arith.constant 0 : i32
    %c0_i32_2 = arith.constant 0 : i32
    return %c0_i32, %c0_i32_0, %c0_i32_1 : i32, i32, i32
  }
  func.func @transform_4(%arg0: i32) -> (i32, i32) {
    %c0_i32 = arith.constant 0 : i32
    %c0_i32_0 = arith.constant 0 : i32
    %c0_i32_1 = arith.constant 0 : i32
    return %c0_i32, %c0_i32_0 : i32, i32
  }
  func.func @transform_5(%arg0: i32) -> (i32, i32, i32, i32) {
    %c0_i32 = arith.constant 0 : i32
    %c0_i32_0 = arith.constant 0 : i32
    %c0_i32_1 = arith.constant 0 : i32
    %c0_i32_2 = arith.constant 0 : i32
    return %arg0, %c0_i32, %c0_i32_0, %c0_i32_1 : i32, i32, i32, i32
  }
}

</mosaic_0001>

<bundles_post_ra>
// kernel: tpu_custom_call.1
= control target key start
LH: loop header
LB: loop body
LE: loop exit
PB: predicated region body
PF: predicated region fallthrough
CT: control target
= control target key end

     0   :  { %10 = vsyncpa [#allocation6], 0  ;;  %s2202_s0 = inlined_call_operand.hbm [shape: bf16[2,6,2,8,8], index: 0, kind: input, shape index: {}]   ;;  %s2203_s1 = inlined_call_operand.hbm [shape: bf16[5,8,16], index: 1, kind: input, shape index: {}]   ;;  %s2204_s2 = inlined_call_operand.vmem [shape: f32[1,16], index: 2, kind: input, shape index: {}]   ;;  %s2205_s3 = inlined_call_operand.hbm [shape: bf16[5,16,16], index: 3, kind: input, shape index: {}]   ;;  %s2206_s4 = inlined_call_operand.vmem [shape: f32[1,16], index: 4, kind: input, shape index: {}]   ;;  %s2207_s5 = inlined_call_operand.hbm [shape: bf16[2,4,8,16], index: 5, kind: output, shape index: {}]  }
   0x1   :  { %12 = vsyncpa [#allocation6 + $0x1], 0 }
   0x2   :  { %13 = vsyncpa [#allocation9], 0 }
   0x3   :  { %14 = vsyncpa [#allocation7], 0 }
   0x4   :  { %16 = vsyncpa [#allocation7 + $0x1], 0  ;;  %s1838_s18 = smov 0   ;;  %s1840_s19 = smov 0  }
   0x5   :  { %s1842_s20 = smov 0   ;;  %s1844_s21 = smov 0  }
   0x6 LB: > { %s1859_s22 = sadd.s32 4294967295, %s1797_s21   ;;  %s1367_s23 = sadd.s32 4294967294, %s1797_s21   ;;  %s1797_s21 = sphi %s1844_s21, %s2229_s21   ;;  %s1793_s20 = sphi %s1842_s20, %s2228_s20   ;;  %s1789_s19 = sphi %s1840_s19, %s2227_s19   ;;  %s1785_s18 = sphi %s1838_s18, %s2226_s18  }
   0x7   : > { %p42_p0 = scmp.ne.s32.totalorder %s1789_s19, %s1785_s18  ;;  %p2208_p1 = scmp.eq.s32.totalorder %s1859_s22, 0 }
   0x8   : > { %p156_p3 = scmp.eq.s32.totalorder %s1367_s23, 1  ;;  %p1368_p5 = scmp.ge.s32.totalorder %s1797_s21, 1 }
   0x9   : > { %p1868_p4 = por %p2208_p1, %p42_p0  ;;  %p163_p7 = scmp.lt.s32.totalorder %s1797_s21, 3 }
   0xa   : > { %p1873_p6 = por %p156_p3, %p42_p0  ;;  %s1799_s27 = smov [#allocation8]  }
   0xb   : > { %s2212_s24 = scalar_select %p1868_p4, 1, 0 }
   0xc   : > { %s2213_s25 = scalar_select %p1873_p6, 1, 0 }
   0xd   : > { %p1878_p8 = pnand %p1368_p5, %p163_p7  ;;  %s175_s28 = sshll.u32 %s1799_s27, 4  ;;  %s1882_s28 = int_to_ptr.vmem [resolvable:$true] %s175_s28 }
   0xe   : > { %s1800_s30 = smov [#allocation10]   ;;  %s1641_s9 = scalar_lea.hbm %s2203_s1, 320 }
   0xf   : > { %p1566_p9 = pneg %p1878_p8  ;;  %s191_s6 = sshll.u32 %s1800_s30, 4  ;;  %s1893_s6 = int_to_ptr.vmem [resolvable:$true] %s191_s6 }
  0x10   : > { %p1642_p12 = scmp.ne.s32.totalorder %s2203_s1, %s1641_s9  ;;  %p1648_p5 = scmp.lt.u32.totalorder %s1641_s9, %s2203_s1 }
  0x11   : > { %p1889_p11 = pnand %p1566_p9, %p2208_p1 }
  0x13   : > { %p1643_p13 = pneg %p1889_p11 }
  0x15   : > { %p1644_p0 = pnand %p1643_p13, %p1642_p12 }
  0x17   : > { %p1645_p3 = pneg %p1644_p0 }
  0x19   : > { %p1650_p7 = pnand %p1648_p5, %p1645_p3 }
  0x1b   : > { %1653 = shalt.err (!%p1650_p7)
}
  0x1c   : > { %s1654_s14 = scalar_lea.vmem %s1882_s28, 320  ;;  %p1662_p2 = scmp.lt.s32.totalorder %s1882_s28, %s1882_s28 }
  0x1d   : > { %p1655_p9 = scmp.ne.s32.totalorder %s1882_s28, %s1654_s14  ;;  %p1663_p12 = scmp.lt.s32.totalorder %s1654_s14, %s1654_s14 }
  0x1f   : > { %p1657_p10 = pnand %p1655_p9, %p1643_p13  ;;  %p1664_p0 = por %p1663_p12, %p1662_p2 }
  0x21   : > { %p1658_p1 = pneg %p1657_p10 }
  0x23   : > { %p1665_p6 = pnand %p1664_p0, %p1658_p1 }
  0x25   : > { %1668 = shalt.err (!%p1665_p6)
}
  0x26   : > { %s2209_s15 = smov 64   ;;  %s1802_s16 = smov 4  }
  0x27   : > { %1569 = dma.hbm_to_vmem [thread:$0]  (!%p1889_p11), %s2203_s1, 320, %s1882_s28, [#allocation9], %s2209_s15, %s2209_s15, %s1802_s16  }
  0x28   : > { %s1669_s7 = scalar_lea.hbm %s2205_s3, 640 }
  0x29   : > { %p1670_p1 = scmp.ne.s32.totalorder %s2205_s3, %s1669_s7  ;;  %p1676_p10 = scmp.lt.u32.totalorder %s1669_s7, %s2205_s3 }
  0x2b   : > { %p1672_p2 = pnand %p1670_p1, %p1643_p13 }
  0x2d   : > { %p1673_p6 = pneg %p1672_p2 }
  0x2f   : > { %p1678_p3 = pnand %p1676_p10, %p1673_p6 }
  0x31   : > { %1681 = shalt.err (!%p1678_p3)
}
  0x32   : > { %s1682_s28 = scalar_lea.vmem %s1893_s6, 640  ;;  %p1690_p12 = scmp.lt.s32.totalorder %s1893_s6, %s1893_s6 }
  0x33   : > { %p1683_p5 = scmp.ne.s32.totalorder %s1893_s6, %s1682_s28  ;;  %p1691_p0 = scmp.lt.s32.totalorder %s1682_s28, %s1682_s28 }
  0x35   : > { %p1685_p7 = pnand %p1683_p5, %p1643_p13  ;;  %p1692_p1 = por %p1691_p0, %p1690_p12 }
  0x37   : > { %p1686_p9 = pneg %p1685_p7 }
  0x39   : > { %p1693_p2 = pnand %p1692_p1, %p1686_p9 }
  0x3b   : > { %1696 = shalt.err (!%p1693_p2)
}
  0x3c   : > { %1572 = dma.hbm_to_vmem [thread:$0]  (!%p1889_p11), %s2205_s3, 640, %s1893_s6, [#allocation9], %s2209_s15, %s2209_s15, %s1802_s16  }
  0x3d   : > { %s1954_s29 = sadd.s32 1, %s1797_s21   ;;  %s29_s14 = sadd.s32 1, %s1793_s20 }
  0x3e   : > { %s26_s17 = ssub.s32 %s1797_s21, %s1954_s29  ;;  %p36_p13 = scmp.ne.s32.totalorder %s1793_s20, %s1789_s19 }
  0x3f   : > { %p27_p6 = scmp.eq.s32.totalorder %s26_s17, 0  ;;  %p37_p10 = scmp.eq.s32.totalorder %s1797_s21, 0 }
  0x40   : > { %p2216_p3 = scmp.eq.s32.totalorder %s1859_s22, 1  ;;  %p1583_p7 = scmp.lt.s32.totalorder %s1797_s21, 2 }
  0x41   : > { %s1970_s27 = scalar_select %p27_p6, %s1793_s20, %s29_s14  }
  0x42   : > { %p1964_p5 = por %p2216_p3, %p36_p13  ;;  %p38_p9 = por %p37_p10, %p36_p13 }
  0x43   : > { %s208_s30 = sand.u32 1, %s1793_s20   ;;  %s1552_s6 = smul.u32 768, %s1797_s21 }
  0x44   : > { %s2217_s23 = scalar_select %p1964_p5, 1, 0 }
  0x45   : > { %s1551_s7 = smul.u32 48, %s208_s30  ;;  %p1974_p11 = pnand %p1583_p7, %p38_p9 }
  0x46   : > { %s1981_s11 = scalar_lea.hbm %s2202_s0, %s1552_s6  ;;  %s1985_s13 = scalar_lea.sflag [#allocation6], %s208_s30 }
  0x47   : > { %s212_s28 = scalar_lea.vmem [#allocation5], %s1551_s7  ;;  %s1697_s14 = scalar_lea.hbm %s1981_s11, 768 }
  0x48   : > { %s219_s12 = sshll.u32 %s212_s28, 4  ;;  %p1698_p12 = scmp.ne.s32.totalorder %s1981_s11, %s1697_s14  ;;  %s1983_s12 = int_to_ptr.vmem [resolvable:$true] %s219_s12 }
  0x49   : > { %p1699_p0 = pneg %p1974_p11  ;;  %s1702_s9 = scalar_lea.hbm %s2202_s0, 1536 }
  0x4a   : > { %p1703_p13 = scmp.lt.u32.totalorder %s1981_s11, %s2202_s0  ;;  %p1704_p6 = scmp.lt.u32.totalorder %s1702_s9, %s1697_s14 }
  0x4b   : > { %p1700_p1 = pnand %p1699_p0, %p1698_p12  ;;  %p1706_p3 = scmp.lt.u32.totalorder %s1697_s14, %s1981_s11 }
  0x4c   : > { %p1705_p10 = por %p1704_p6, %p1703_p13 }
  0x4d   : > { %p1701_p2 = pneg %p1700_p1 }
  0x4e   : > { %p1707_p7 = por %p1706_p3, %p1705_p10 }
  0x50   : > { %p1708_p9 = pnand %p1707_p7, %p1701_p2 }
  0x52   : > { %1711 = shalt.err (!%p1708_p9)
}
  0x53   : > { %s1712_s30 = scalar_lea.vmem %s1983_s12, 768  ;;  %s1803_s7 = smov [#allocation5]  }
  0x54   : > { %p1713_p12 = scmp.ne.s32.totalorder %s1983_s12, %s1712_s30  ;;  %s1717_s28 = sshll.u32 %s1803_s7, 4  ;;  %s1718_s28 = int_to_ptr.vmem [resolvable:$false] %s1717_s28 }
  0x55   : > { %s1719_s15 = scalar_lea.vmem %s1718_s28, 1536  ;;  %p1720_p4 = scmp.lt.s32.totalorder %s1983_s12, %s1718_s28 }
  0x56   : > { %p1715_p1 = pnand %p1713_p12, %p1699_p0  ;;  %p1721_p13 = scmp.lt.s32.totalorder %s1719_s15, %s1712_s30 }
  0x58   : > { %p1716_p5 = pneg %p1715_p1  ;;  %p1722_p6 = por %p1721_p13, %p1720_p4 }
  0x5a   : > { %p1723_p10 = pnand %p1722_p6, %p1716_p5 }
  0x5c   : > { %1726 = shalt.err (!%p1723_p10)
}
  0x5d   : > { %s2219_s14 = smov 64   ;;  %231 = sbr.rel (%p1878_p8) target bundleno = 678 (0x2a6), region = 40 }
  0x5e   : > { %1576 = dma.hbm_to_vmem [thread:$0]  (!%p1974_p11), %s1981_s11, 768, %s1983_s12, %s1985_s13, %s2219_s14, %s2219_s14, %s1802_s16  }
  0x5f   : > { %s2019_s17 = sand.u32 (!%p1878_p8), 1, %s1789_s19   ;;  %p2220_p4 = scmp.ne.s32.totalorder (!%p1878_p8), %s2212_s24, 0 }
  0x60   : > { %s1553_s6 = smul.u32 (!%p1878_p8), 48, %s2019_s17  ;;  %s234_s9 = scalar_lea.sflag (!%p1878_p8), [#allocation6], %s2019_s17 }
  0x62   : > { %s2023_s10 = scalar_lea.vmem (!%p1878_p8), [#allocation5], %s1553_s6 }
  0x64   : > { %1772 = dma.done.wait (%p2220_p4), %s234_s9, 768  }
  0x65   : > { %1774 = vsyncadd (%p2220_p4), %s234_s9, 4294966528  ;;  %p2221_p5 = scmp.eq.s32.totalorder %s1859_s22, 0 }
  0x67   : > { %1776 = dma.done.wait (%p2221_p5), [#allocation9], 960   ;;  %p2222_p8 = pmov %p2221_p5 }
  0x68   : > { %vm273_vm0 = vcmask 130048   ;;  %v1804_v0 = vmov 0.0   ;;  %vm304_vm1 = vcmask 1043456   ;;  %vm297_vm2 = vcmask 64512   ;;  %v286_v1 = vld [vmem:[#allocation8] sm:$0xf] }
  0x69   : > { %1778 = vsyncadd (%p2222_p8), [#allocation9], 4294966336  ;;  %276 = vst.msk [vmem:[#allocation3 + $0x10] sm:$0xff] %vm273_vm0, %v1804_v0  ;;  %1546 = vmatprep.subr.msk.bf16.mxu0 %vm304_vm1, %v286_v1  ;;  %v306_v2 = vsel %vm304_vm1, %v286_v1, 0  ;;  %v1626_v3 = vld [vmem:[%s2023_s10] ss:$8 sps:$4 sm:$0xff]  }
  0x6a   : > { %274 = vst.msk [vmem:[#allocation3] sm:$0xff] %vm273_vm0, %v1804_v0  ;;  %275 = vst.msk [vmem:[#allocation3 + $0x8] sm:$0xff] %vm273_vm0, %v1804_v0  ;;  %1487 = vmatpush3.bf16.msra.mxu0 %v306_v2  ;;  %v1627_v4 = vld [vmem:[%s2023_s10 + $0x10] ss:$8 sps:$4 sm:$0xff]   ;;  %v375_v5 = vld [vmem:[#allocation8 + $0x4] sm:$0xf]  ;;  %1488 = vmatprep.mubr.msk.bf16.mxu0 %vm297_vm2, %v1626_v3 }
  0x6b   : > { %277 = vst.msk [vmem:[#allocation3 + $0x18] sm:$0xff] %vm273_vm0, %v1804_v0  ;;  %740 = vst.msk [vmem:[#allocation2] sm:$0xff] %vm273_vm0, %v1804_v0  ;;  %1547 = vmatprep.subr.msk.bf16.mxu1 %vm304_vm1, %v375_v5  ;;  %v393_v6 = vsel %vm304_vm1, %v375_v5, 0  ;;  %v1628_v7 = vld [vmem:[%s2023_s10 + $0x4] ss:$8 sps:$4 sm:$0xff]   ;;  %vm741_vm3 = vcmask 125952  }
  0x6c   : > { %743 = vst.msk [vmem:[#allocation2 + $0x10] sm:$0xff] %vm273_vm0, %v1804_v0  ;;  %745 = vst.msk [vmem:[#allocation2 + $0x20] sm:$0xff] %vm273_vm0, %v1804_v0  ;;  %1493 = vmatpush3.bf16.msra.mxu1 %v393_v6  ;;  %v1629_v8 = vld [vmem:[%s2023_s10 + $0x14] ss:$8 sps:$4 sm:$0xff]   ;;  %v462_v9 = vld [vmem:[#allocation8 + $0x8] sm:$0xf]  ;;  %1494 = vmatprep.mubr.msk.bf16.mxu1 %vm297_vm2, %v1628_v7 }
  0x6d   : > { %747 = vst.msk [vmem:[#allocation2 + $0x30] sm:$0xff] %vm273_vm0, %v1804_v0  ;;  %753 = vst.msk [vmem:[#allocation4] sm:$0xff] %vm273_vm0, %v1804_v0  ;;  %1489 = vmatmul.mubr.msk.bf16.vlgmr.msra.gmra.mrb[0].mxu0 %vm297_vm2, %v1627_v4  ;;  %1548 = vmatprep.subr.msk.bf16.mxu0 %vm304_vm1, %v462_v9  ;;  %v480_v10 = vsel %vm304_vm1, %v462_v9, 0  ;;  %v1630_v11 = vld [vmem:[%s2023_s10 + $0x8] ss:$8 sps:$4 sm:$0xff]   ;;  %s1376_s11 = sshll.u32 %s2019_s17, 4 }
  0x6e   : > { %754 = vst.msk [vmem:[#allocation4 + $0x8] sm:$0xff] %vm273_vm0, %v1804_v0  ;;  %755 = vst.msk [vmem:[#allocation4 + $0x10] sm:$0xff] %vm273_vm0, %v1804_v0  ;;  %1499 = vmatpush3.bf16.msra.mxu0 %v480_v10  ;;  %v1631_v12 = vld [vmem:[%s2023_s10 + $0x18] ss:$8 sps:$4 sm:$0xff]   ;;  %1500 = vmatprep.mubr.msk.bf16.mxu0 %vm297_vm2, %v1630_v11  ;;  %v549_v13 = vld [vmem:[#allocation8 + $0xc] sm:$0xf] }
  0x6f   : > { %756 = vst.msk [vmem:[#allocation4 + $0x18] sm:$0xff] %vm273_vm0, %v1804_v0  ;;  %1495 = vmatmul.mubr.msk.bf16.vlgmr.msra.gmra.mrb[0].mxu1 %vm297_vm2, %v1629_v8  ;;  %1549 = vmatprep.subr.msk.bf16.mxu1 %vm304_vm1, %v549_v13  ;;  %v567_v14 = vsel %vm304_vm1, %v549_v13, 0  ;;  %v1632_v15 = vld [vmem:[%s2023_s10 + $0xc] ss:$8 sps:$4 sm:$0xff]   ;;  %v1633_v16 = vld [vmem:[%s2023_s10 + $0x1c] ss:$8 sps:$4 sm:$0xff]  }
  0x70   : > { %1505 = vmatpush3.bf16.msra.mxu1 %v567_v14  ;;  %v636_v17 = vld [vmem:[#allocation8 + $0x10] sm:$0xf]  ;;  %1506 = vmatprep.mubr.msk.bf16.mxu1 %vm297_vm2, %v1632_v15  ;;  %742 = vst.msk [vmem:[#allocation2 + $0x8] sm:$0xf] %vm741_vm3, %v1804_v0  ;;  %744 = vst.msk [vmem:[#allocation2 + $0x18] sm:$0xf] %vm741_vm3, %v1804_v0 }
  0x71   : > { %1550 = vmatprep.subr.msk.bf16.mxu0 %vm304_vm1, %v636_v17  ;;  %v654_v18 = vsel %vm304_vm1, %v636_v17, 0  ;;  %v1634_v19 = vld [vmem:[%s2023_s10 + $0x10] ss:$8 sps:$4 sm:$0xff]   ;;  %v1635_v20 = vld [vmem:[%s2023_s10 + $0x20] ss:$8 sps:$4 sm:$0xff]   ;;  %s1455_s12 = sshll.u32 %s1859_s22, 8 }
  0x72   : > { %746 = vst.msk [vmem:[#allocation2 + $0x28] sm:$0xf] %vm741_vm3, %v1804_v0  ;;  %748 = vst.msk [vmem:[#allocation2 + $0x38] sm:$0xf] %vm741_vm3, %v1804_v0  ;;  %v1636_v21 = vld [vmem:[#allocation10] sm:$0xff]   ;;  %v1637_v22 = vld [vmem:[#allocation10 + $0x8] sm:$0xff]   ;;  %s2153_s15 = scalar_lea.hbm %s2207_s5, %s1455_s12 }
  0x73   : > { %1516 = vmatprep.subr.bf16.mxu1 %v1636_v21  ;;  %v2079_v23 = vld [vmem:[#allocation10 + $0x10] sm:$0xff]   ;;  %v2081_v24 = vld [vmem:[#allocation10 + $0x18] sm:$0xff]   ;;  %v285_v28 = vld [vmem:[#allocation3 + $0x18] sm:$0xff]  ;;  %s271_s13 = scalar_lea.vmem [#allocation11], %s1376_s11  ;;  %s1262_s22 = scalar_lea.sflag [#allocation7], %s2019_s17 }
  0x74   : > { %v284_v25 = vld [vmem:[#allocation3 + $0x10] sm:$0xff]  ;;  %v282_v26 = vld [vmem:[#allocation3] sm:$0xff]  ;;  %v283_v31 = vld [vmem:[#allocation3 + $0x8] sm:$0xff]  ;;  %s1275_s30 = sshll.u32 %s271_s13, 4  ;;  %p2223_p0 = scmp.ne.s32.totalorder %s2217_s23, 0  ;;  %s2155_s30 = int_to_ptr.vmem [resolvable:$true] %s1275_s30 }
  0x75   : > { %1501 = vmatmul.mubr.msk.bf16.vlgmr.msra.gmra.mrb[4].mxu0 %vm297_vm2, %v1631_v12  ;;  %s1727_s14 = scalar_lea.vmem %s2155_s30, 256  ;;  %s1805_s6 = smov [#allocation11]  }
  0x76   : > { %1511 = vmatpush3.bf16.msra.mxu0 %v654_v18  ;;  %1512 = vmatprep.mubr.msk.bf16.mxu0 %vm297_vm2, %v1634_v19  ;;  %p1728_p11 = scmp.ne.s32.totalorder %s2155_s30, %s1727_s14  ;;  %s1731_s9 = sshll.u32 %s1805_s6, 4  ;;  %s1732_s9 = int_to_ptr.vmem [resolvable:$false] %s1731_s9 }
  0x77   : > { %1507 = vmatmul.mubr.msk.bf16.vlgmr.msra.gmra.mrb[4].mxu1 %vm297_vm2, %v1633_v16  ;;  %1522 = vmatprep.subr.bf16.mxu0 %v1637_v22  ;;  %s1733_s10 = scalar_lea.vmem %s1732_s9, 512  ;;  %p1734_p7 = scmp.lt.s32.totalorder %s2155_s30, %s1732_s9 }
  0x78   : > { %1517 = vmatpush3.bf16.msra.mxu1 %v1636_v21  ;;  %v1413_v21 = vld [vmem:[%s2204_s2] ss:$0 sm:$0xff]  ;;  %p1729_p2 = pnand %p1728_p11, %p2223_p0  ;;  %p1735_p9 = scmp.lt.s32.totalorder %s1733_s10, %s1727_s14 }
  0x79   : > { %1528 = vmatprep.subr.bf16.mxu1 %v2079_v23 }
  0x7a   : > { %p1730_p3 = pneg %p1729_p2  ;;  %p1736_p12 = por %p1735_p9, %p1734_p7 }
  0x7c   : > { %p1737_p1 = pnand %p1736_p12, %p1730_p3 }
  0x7d   : > { %1513 = vmatmul.mubr.msk.bf16.vlgmr.msra.gmra.mrb[8].mxu0 %vm297_vm2, %v1635_v20 }
  0x7e   : > { %1523 = vmatpush3.bf16.msra.mxu0 %v1637_v22 }
  0x7f   : > { %1534 = vmatprep.subr.bf16.mxu0 %v2081_v24 }
 0x140   : > { %v1490_v27 = vpop.f32.mrb[0].mxu0 }
 0x141   : > { %v359_v29 = vadd.f32 %v1490_v27, %v284_v25  ;;  %v342_v30 = vpop.f32.mrb[1].mxu0 }
 0x142   : > { %v357_v32 = vadd.f32 %v342_v30, %v282_v26  ;;  %v1491_v33 = vpop.f32.mrb[2].mxu0  ;;  %v1496_v34 = vpop.f32.mrb[0].mxu1 }
 0x143   : > { %363 = vst.msk [vmem:[#allocation3 + $0x10] sm:$0xff] %vm273_vm0, %v359_v29  ;;  %v360_v35 = vadd.f32 %v1491_v33, %v285_v28  ;;  %v345_v36 = vpop.f32.mrb[3].mxu0  ;;  %v429_v37 = vpop.f32.mrb[1].mxu1 }
 0x144   : > { %361 = vst.msk [vmem:[#allocation3] sm:$0xff] %vm273_vm0, %v357_v32  ;;  %v358_v38 = vadd.f32 %v345_v36, %v283_v31  ;;  %v1497_v39 = vpop.f32.mrb[2].mxu1 }
 0x145   : > { %364 = vst.msk [vmem:[#allocation3 + $0x18] sm:$0xff] %vm273_vm0, %v360_v35  ;;  %v432_v40 = vpop.f32.mrb[3].mxu1 }
 0x146   : > { %362 = vst.msk [vmem:[#allocation3 + $0x8] sm:$0xff] %vm273_vm0, %v358_v38 }
 0x148   : > { %v1502_v41 = vpop.f32.mrb[4].mxu0 }
 0x149   : > { %v516_v42 = vpop.f32.mrb[5].mxu0 }
 0x14a   : > { %v372_v43 = vld [vmem:[#allocation3 + $0x10] sm:$0xff]  ;;  %v1503_v44 = vpop.f32.mrb[6].mxu0  ;;  %v1508_v45 = vpop.f32.mrb[4].mxu1 }
 0x14b   : > { %v446_v46 = vadd.f32 %v1496_v34, %v372_v43  ;;  %v370_v47 = vld [vmem:[#allocation3] sm:$0xff]  ;;  %v519_v48 = vpop.f32.mrb[7].mxu0  ;;  %v603_v49 = vpop.f32.mrb[5].mxu1 }
 0x14c   : > { %v444_v50 = vadd.f32 %v429_v37, %v370_v47  ;;  %v373_v51 = vld [vmem:[#allocation3 + $0x18] sm:$0xff]  ;;  %v1509_v52 = vpop.f32.mrb[6].mxu1 }
 0x14d   : > { %450 = vst.msk [vmem:[#allocation3 + $0x10] sm:$0xff] %vm273_vm0, %v446_v46  ;;  %v447_v53 = vadd.f32 %v1497_v39, %v373_v51  ;;  %v371_v54 = vld [vmem:[#allocation3 + $0x8] sm:$0xff]  ;;  %v606_v55 = vpop.f32.mrb[7].mxu1 }
 0x14e   : > { %448 = vst.msk [vmem:[#allocation3] sm:$0xff] %vm273_vm0, %v444_v50  ;;  %v445_v56 = vadd.f32 %v432_v40, %v371_v54 }
 0x14f   : > { %451 = vst.msk [vmem:[#allocation3 + $0x18] sm:$0xff] %vm273_vm0, %v447_v53 }
 0x150   : > { %449 = vst.msk [vmem:[#allocation3 + $0x8] sm:$0xff] %vm273_vm0, %v445_v56  ;;  %v1514_v57 = vpop.f32.mrb[8].mxu0 }
 0x151   : > { %v690_v58 = vpop.f32.mrb[9].mxu0 }
 0x152   : > { %v1515_v59 = vpop.f32.mrb[10].mxu0 }
 0x153   : > { %v693_v60 = vpop.f32.mrb[11].mxu0 }
 0x154   : > { %v459_v61 = vld [vmem:[#allocation3 + $0x10] sm:$0xff] }
 0x155   : > { %v533_v62 = vadd.f32 %v1502_v41, %v459_v61  ;;  %v457_v63 = vld [vmem:[#allocation3] sm:$0xff] }
 0x156   : > { %v531_v0 = vadd.f32 %v516_v42, %v457_v63  ;;  %v460_v1 = vld [vmem:[#allocation3 + $0x18] sm:$0xff] }
 0x157   : > { %537 = vst.msk [vmem:[#allocation3 + $0x10] sm:$0xff] %vm273_vm0, %v533_v62  ;;  %v534_v2 = vadd.f32 %v1503_v44, %v460_v1  ;;  %v458_v3 = vld [vmem:[#allocation3 + $0x8] sm:$0xff] }
 0x158   : > { %535 = vst.msk [vmem:[#allocation3] sm:$0xff] %vm273_vm0, %v531_v0  ;;  %v532_v4 = vadd.f32 %v519_v48, %v458_v3 }
 0x159   : > { %538 = vst.msk [vmem:[#allocation3 + $0x18] sm:$0xff] %vm273_vm0, %v534_v2 }
 0x15a   : > { %536 = vst.msk [vmem:[#allocation3 + $0x8] sm:$0xff] %vm273_vm0, %v532_v4 }
 0x15e   : > { %v546_v5 = vld [vmem:[#allocation3 + $0x10] sm:$0xff] }
 0x15f   : > { %v620_v6 = vadd.f32 %v1508_v45, %v546_v5  ;;  %v544_v7 = vld [vmem:[#allocation3] sm:$0xff]  ;;  %v767_v5 = vld [vmem:[#allocation4 + $0x10] sm:$0xff] }
 0x160   : > { %v618_v8 = vadd.f32 %v603_v49, %v544_v7  ;;  %v547_v9 = vld [vmem:[#allocation3 + $0x18] sm:$0xff] }
 0x161   : > { %624 = vst.msk [vmem:[#allocation3 + $0x10] sm:$0xff] %vm273_vm0, %v620_v6  ;;  %v621_v10 = vadd.f32 %v1509_v52, %v547_v9  ;;  %v545_v11 = vld [vmem:[#allocation3 + $0x8] sm:$0xff]  ;;  %v765_v6 = vld [vmem:[#allocation4] sm:$0xff]  ;;  %v768_v9 = vld [vmem:[#allocation4 + $0x18] sm:$0xff] }
 0x162   : > { %622 = vst.msk [vmem:[#allocation3] sm:$0xff] %vm273_vm0, %v618_v8  ;;  %v619_v12 = vadd.f32 %v606_v55, %v545_v11 }
 0x163   : > { %625 = vst.msk [vmem:[#allocation3 + $0x18] sm:$0xff] %vm273_vm0, %v621_v10 }
 0x164   : > { %623 = vst.msk [vmem:[#allocation3 + $0x8] sm:$0xff] %vm273_vm0, %v619_v12 }
 0x168   : > { %v633_v13 = vld [vmem:[#allocation3 + $0x10] sm:$0xff] }
 0x169   : > { %v707_v14 = vadd.f32 %v1514_v57, %v633_v13  ;;  %v631_v15 = vld [vmem:[#allocation3] sm:$0xff]  ;;  %v766_v13 = vld [vmem:[#allocation4 + $0x8] sm:$0xff] }
 0x16a   : > { %v705_v16 = vadd.f32 %v690_v58, %v631_v15  ;;  %v634_v17 = vld [vmem:[#allocation3 + $0x18] sm:$0xff] }
 0x16b   : > { %711 = vst.msk [vmem:[#allocation3 + $0x10] sm:$0xff] %vm273_vm0, %v707_v14  ;;  %v708_v18 = vadd.f32 %v1515_v59, %v634_v17  ;;  %v632_v19 = vld [vmem:[#allocation3 + $0x8] sm:$0xff]  ;;  %v1640_v58 = vld [vmem:[#allocation10 + $0x20] sm:$0xff]  }
 0x16c   : > { %709 = vst.msk [vmem:[#allocation3] sm:$0xff] %vm273_vm0, %v705_v16  ;;  %v706_v20 = vadd.f32 %v693_v60, %v632_v19 }
 0x16d   : > { %712 = vst.msk [vmem:[#allocation3 + $0x18] sm:$0xff] %vm273_vm0, %v708_v18 }
 0x16e   : > { %710 = vst.msk [vmem:[#allocation3 + $0x8] sm:$0xff] %vm273_vm0, %v706_v20 }
 0x172   : > { %v715_v22 = vld [vmem:[#allocation3 + $0x10] sm:$0xff] }
 0x173   : > { %v726_v25 = vadd.f32 %v1413_v21, %v715_v22  ;;  %v713_v26 = vld [vmem:[#allocation3] sm:$0xff] }
 0x174   : > { %v724_v27 = vadd.f32 %v1413_v21, %v713_v26  ;;  %v716_v28 = vld [vmem:[#allocation3 + $0x18] sm:$0xff] }
 0x175   : > { %vm730_vm4 = vcmp.ge.f32.partialorder %v726_v25, 0.0  ;;  %v734_v29 = vmul.f32 0.1, %v726_v25  ;;  %v727_v30 = vadd.f32 %v1413_v21, %v716_v28  ;;  %v714_v31 = vld [vmem:[#allocation3 + $0x8] sm:$0xff] }
 0x176   : > { %vm728_vm5 = vcmp.ge.f32.partialorder %v724_v27, 0.0  ;;  %v732_v32 = vmul.f32 0.1, %v724_v27  ;;  %v725_v33 = vadd.f32 %v1413_v21, %v714_v31 }
 0x177   : > { %v738_v34 = vsel %vm730_vm4, %v726_v25, %v734_v29  ;;  %vm731_vm6 = vcmp.ge.f32.partialorder %v727_v30, 0.0  ;;  %v735_v35 = vmul.f32 0.1, %v727_v30 }
 0x178   : > { %v736_v36 = vsel %vm728_vm5, %v724_v27, %v732_v32  ;;  %vm729_vm7 = vcmp.ge.f32.partialorder %v725_v33, 0.0  ;;  %v733_v37 = vmul.f32 0.1, %v725_v33  ;;  %751 = vst.msk [vmem:[#allocation2 + $0x22] sm:$0xff] %vm273_vm0, %v738_v34 }
 0x179   : > { %v739_v38 = vsel %vm731_vm6, %v727_v30, %v735_v35  ;;  %749 = vst.msk [vmem:[#allocation2 + $0x2] sm:$0xff] %vm273_vm0, %v736_v36 }
 0x17a   : > { %v737_v39 = vsel %vm729_vm7, %v725_v33, %v733_v37  ;;  %752 = vst.msk [vmem:[#allocation2 + $0x32] sm:$0xff] %vm273_vm0, %v739_v38 }
 0x17b   : > { %750 = vst.msk [vmem:[#allocation2 + $0x12] sm:$0xff] %vm273_vm0, %v737_v39 }
 0x17f   : > { %v759_v49 = vld [vmem:[#allocation2 + $0x20] sm:$0xff] }
 0x180   : > { %v757_v40 = vld [vmem:[#allocation2] sm:$0xff] }
 0x181   : > { %v850_v41 = vld [vmem:[#allocation2 + $0x1] sm:$0xff]  ;;  %v760_v42 = vld [vmem:[#allocation2 + $0x30] sm:$0xff] }
 0x182   : > { %v853_v43 = vld [vmem:[#allocation2 + $0x31] sm:$0xff]  ;;  %v852_v50 = vld [vmem:[#allocation2 + $0x21] sm:$0xff]  ;;  %v1446_v52 = vpack.c.bf16 %v760_v42, %v759_v49 }
 0x183   : > { %v758_v44 = vld [vmem:[#allocation2 + $0x10] sm:$0xff]  ;;  %v1448_v53 = vpack.c.bf16 %v853_v43, %v852_v50  ;;  %v944_v54 = vld [vmem:[#allocation2 + $0x2] sm:$0xff] }
 0x184   : > { %v851_v45 = vld [vmem:[#allocation2 + $0x11] sm:$0xff]  ;;  %v1445_v47 = vpack.c.bf16 %v758_v44, %v757_v40  ;;  %v1038_v55 = vld [vmem:[#allocation2 + $0x3] sm:$0xff] }
 0x185   : > { %v945_v46 = vld [vmem:[#allocation2 + $0x12] sm:$0xff]  ;;  %v1447_v48 = vpack.c.bf16 %v851_v45, %v850_v41  ;;  %v946_v62 = vld [vmem:[#allocation2 + $0x22] sm:$0xff] }
 0x186   : > { %v1039_v51 = vld [vmem:[#allocation2 + $0x13] sm:$0xff]  ;;  %1518 = vmatprep.mubr.msk.bf16.mxu1 %vm273_vm0, %v1445_v47  ;;  %v1449_v56 = vpack.c.bf16 %v945_v46, %v944_v54  ;;  %v1040_v63 = vld [vmem:[#allocation2 + $0x23] sm:$0xff] }
 0x187   : > { %1524 = vmatprep.mubr.msk.bf16.mxu0 %vm273_vm0, %v1447_v48  ;;  %v1451_v57 = vpack.c.bf16 %v1039_v51, %v1038_v55  ;;  %1519 = vmatmul.mubr.msk.bf16.vlgmr.msra.gmra.mrb[8].mxu1 %vm273_vm0, %v1446_v52  ;;  %v947_v59 = vld [vmem:[#allocation2 + $0x32] sm:$0xff]  ;;  %v1132_v2 = vld [vmem:[#allocation2 + $0x4] sm:$0xff] }
 0x188   : > { %1525 = vmatmul.mubr.msk.bf16.vlgmr.msra.gmra.mrb[12].mxu0 %vm273_vm0, %v1448_v53  ;;  %1530 = vmatprep.mubr.msk.bf16.mxu1 %vm273_vm0, %v1449_v56  ;;  %v1041_v60 = vld [vmem:[#allocation2 + $0x33] sm:$0xff]  ;;  %v1450_v0 = vpack.c.bf16 %v947_v59, %v946_v62  ;;  %v1134_v4 = vld [vmem:[#allocation2 + $0x24] sm:$0xff] }
 0x189   : > { %1536 = vmatprep.mubr.msk.bf16.mxu0 %vm273_vm0, %v1451_v57  ;;  %1529 = vmatpush3.bf16.msra.mxu1 %v2079_v23  ;;  %v1133_v61 = vld [vmem:[#allocation2 + $0x14] sm:$0xff]  ;;  %v1452_v1 = vpack.c.bf16 %v1041_v60, %v1040_v63 }
 0x18a   : > { %1535 = vmatpush3.bf16.msra.mxu0 %v2081_v24  ;;  %1540 = vmatprep.subr.bf16.mxu1 %v1640_v58  ;;  %v1453_v3 = vpack.c.bf16 %v1133_v61, %v1132_v2  ;;  %v1135_v23 = vld [vmem:[#allocation2 + $0x34] sm:$0xff] }
 0x18b   : > { %v1454_v24 = vpack.c.bf16 %v1135_v23, %v1134_v4 }
 0x18f   : > { %1531 = vmatmul.mubr.msk.bf16.vlgmr.msra.gmra.mrb[12].mxu1 %vm273_vm0, %v1450_v0 }
 0x190   : > { %1537 = vmatmul.mubr.msk.bf16.vlgmr.msra.gmra.mrb[16].mxu0 %vm273_vm0, %v1452_v1  ;;  %1542 = vmatprep.mubr.msk.bf16.mxu1 %vm273_vm0, %v1453_v3  ;;  %v1439_v3 = vld [vmem:[%s2206_s4] ss:$0 sm:$0xff] }
 0x191   : > { %1541 = vmatpush3.bf16.msra.mxu1 %v1640_v58 }
 0x197   : > { %1543 = vmatmul.mubr.msk.bf16.vlgmr.msra.gmra.mrb[16].mxu1 %vm273_vm0, %v1454_v24 }
 0x25a   : > { %v1520_v7 = vpop.f32.mrb[8].mxu1 }
 0x25b   : > { %v1526_v8 = vpop.f32.mrb[12].mxu0  ;;  %v844_v10 = vadd.f32 %v1520_v7, %v767_v5  ;;  %v827_v11 = vpop.f32.mrb[9].mxu1 }
 0x25c   : > { %v921_v12 = vpop.f32.mrb[13].mxu0  ;;  %v842_v14 = vadd.f32 %v827_v11, %v765_v6  ;;  %v1521_v15 = vpop.f32.mrb[10].mxu1 }
 0x25d   : > { %v1527_v16 = vpop.f32.mrb[14].mxu0  ;;  %848 = vst.msk [vmem:[#allocation4 + $0x10] sm:$0xff] %vm273_vm0, %v844_v10  ;;  %v845_v17 = vadd.f32 %v1521_v15, %v768_v9  ;;  %v830_v18 = vpop.f32.mrb[11].mxu1 }
 0x25e   : > { %v924_v19 = vpop.f32.mrb[15].mxu0  ;;  %846 = vst.msk [vmem:[#allocation4] sm:$0xff] %vm273_vm0, %v842_v14  ;;  %v843_v20 = vadd.f32 %v830_v18, %v766_v13 }
 0x25f   : > { %849 = vst.msk [vmem:[#allocation4 + $0x18] sm:$0xff] %vm273_vm0, %v845_v17 }
 0x260   : > { %847 = vst.msk [vmem:[#allocation4 + $0x8] sm:$0xff] %vm273_vm0, %v843_v20 }
 0x262   : > { %v1532_v21 = vpop.f32.mrb[12].mxu1 }
 0x263   : > { %v1538_v22 = vpop.f32.mrb[16].mxu0  ;;  %v1015_v25 = vpop.f32.mrb[13].mxu1 }
 0x264   : > { %v1109_v26 = vpop.f32.mrb[17].mxu0  ;;  %v860_v27 = vld [vmem:[#allocation4 + $0x10] sm:$0xff]  ;;  %v1533_v28 = vpop.f32.mrb[14].mxu1 }
 0x265   : > { %v1539_v29 = vpop.f32.mrb[18].mxu0  ;;  %v938_v30 = vadd.f32 %v1526_v8, %v860_v27  ;;  %v858_v31 = vld [vmem:[#allocation4] sm:$0xff]  ;;  %v1018_v32 = vpop.f32.mrb[15].mxu1 }
 0x266   : > { %v1112_v33 = vpop.f32.mrb[19].mxu0  ;;  %v936_v34 = vadd.f32 %v921_v12, %v858_v31  ;;  %v861_v35 = vld [vmem:[#allocation4 + $0x18] sm:$0xff] }
 0x267   : > { %942 = vst.msk [vmem:[#allocation4 + $0x10] sm:$0xff] %vm273_vm0, %v938_v30  ;;  %v939_v36 = vadd.f32 %v1527_v16, %v861_v35  ;;  %v859_v37 = vld [vmem:[#allocation4 + $0x8] sm:$0xff] }
 0x268   : > { %940 = vst.msk [vmem:[#allocation4] sm:$0xff] %vm273_vm0, %v936_v34  ;;  %v937_v38 = vadd.f32 %v924_v19, %v859_v37 }
 0x269   : > { %943 = vst.msk [vmem:[#allocation4 + $0x18] sm:$0xff] %vm273_vm0, %v939_v36 }
 0x26a   : > { %941 = vst.msk [vmem:[#allocation4 + $0x8] sm:$0xff] %vm273_vm0, %v937_v38  ;;  %v1544_v39 = vpop.f32.mrb[16].mxu1 }
 0x26b   : > { %v1203_v40 = vpop.f32.mrb[17].mxu1 }
 0x26c   : > { %v1545_v41 = vpop.f32.mrb[18].mxu1 }
 0x26d   : > { %v1206_v42 = vpop.f32.mrb[19].mxu1 }
 0x26e   : > { %v954_v43 = vld [vmem:[#allocation4 + $0x10] sm:$0xff] }
 0x26f   : > { %v1032_v44 = vadd.f32 %v1532_v21, %v954_v43  ;;  %v952_v45 = vld [vmem:[#allocation4] sm:$0xff] }
 0x270   : > { %v1030_v46 = vadd.f32 %v1015_v25, %v952_v45  ;;  %v955_v47 = vld [vmem:[#allocation4 + $0x18] sm:$0xff] }
 0x271   : > { %1036 = vst.msk [vmem:[#allocation4 + $0x10] sm:$0xff] %vm273_vm0, %v1032_v44  ;;  %v1033_v48 = vadd.f32 %v1533_v28, %v955_v47  ;;  %v953_v49 = vld [vmem:[#allocation4 + $0x8] sm:$0xff] }
 0x272   : > { %1034 = vst.msk [vmem:[#allocation4] sm:$0xff] %vm273_vm0, %v1030_v46  ;;  %v1031_v50 = vadd.f32 %v1018_v32, %v953_v49 }
 0x273   : > { %1037 = vst.msk [vmem:[#allocation4 + $0x18] sm:$0xff] %vm273_vm0, %v1033_v48 }
 0x274   : > { %1035 = vst.msk [vmem:[#allocation4 + $0x8] sm:$0xff] %vm273_vm0, %v1031_v50 }
 0x278   : > { %v1048_v51 = vld [vmem:[#allocation4 + $0x10] sm:$0xff] }
 0x279   : > { %v1126_v52 = vadd.f32 %v1538_v22, %v1048_v51  ;;  %v1046_v53 = vld [vmem:[#allocation4] sm:$0xff] }
 0x27a   : > { %v1124_v54 = vadd.f32 %v1109_v26, %v1046_v53  ;;  %v1049_v55 = vld [vmem:[#allocation4 + $0x18] sm:$0xff] }
 0x27b   : > { %1130 = vst.msk [vmem:[#allocation4 + $0x10] sm:$0xff] %vm273_vm0, %v1126_v52  ;;  %v1127_v56 = vadd.f32 %v1539_v29, %v1049_v55  ;;  %v1047_v57 = vld [vmem:[#allocation4 + $0x8] sm:$0xff] }
 0x27c   : > { %1128 = vst.msk [vmem:[#allocation4] sm:$0xff] %vm273_vm0, %v1124_v54  ;;  %v1125_v58 = vadd.f32 %v1112_v33, %v1047_v57 }
 0x27d   : > { %1131 = vst.msk [vmem:[#allocation4 + $0x18] sm:$0xff] %vm273_vm0, %v1127_v56 }
 0x27e   : > { %1129 = vst.msk [vmem:[#allocation4 + $0x8] sm:$0xff] %vm273_vm0, %v1125_v58 }
 0x282   : > { %v1142_v59 = vld [vmem:[#allocation4 + $0x10] sm:$0xff] }
 0x283   : > { %v1220_v60 = vadd.f32 %v1544_v39, %v1142_v59  ;;  %v1140_v61 = vld [vmem:[#allocation4] sm:$0xff] }
 0x284   : > { %v1218_v62 = vadd.f32 %v1203_v40, %v1140_v61  ;;  %v1143_v63 = vld [vmem:[#allocation4 + $0x18] sm:$0xff] }
 0x285   : > { %1224 = vst.msk [vmem:[#allocation4 + $0x10] sm:$0xff] %vm273_vm0, %v1220_v60  ;;  %v1221_v0 = vadd.f32 %v1545_v41, %v1143_v63  ;;  %v1141_v1 = vld [vmem:[#allocation4 + $0x8] sm:$0xff] }
 0x286   : > { %1222 = vst.msk [vmem:[#allocation4] sm:$0xff] %vm273_vm0, %v1218_v62  ;;  %v1219_v2 = vadd.f32 %v1206_v42, %v1141_v1 }
 0x287   : > { %1225 = vst.msk [vmem:[#allocation4 + $0x18] sm:$0xff] %vm273_vm0, %v1221_v0 }
 0x288   : > { %1223 = vst.msk [vmem:[#allocation4 + $0x8] sm:$0xff] %vm273_vm0, %v1219_v2 }
 0x28c   : > { %v1228_v23 = vld [vmem:[#allocation4 + $0x10] sm:$0xff] }
 0x28d   : > { %v1226_v4 = vld [vmem:[#allocation4] sm:$0xff]  ;;  %v1239_v24 = vadd.f32 %v1439_v3, %v1228_v23 }
 0x28e   : > { %v1229_v5 = vld [vmem:[#allocation4 + $0x18] sm:$0xff]  ;;  %v1237_v6 = vadd.f32 %v1439_v3, %v1226_v4 }
 0x28f   : > { %v1227_v7 = vld [vmem:[#allocation4 + $0x8] sm:$0xff]  ;;  %v1240_v8 = vadd.f32 %v1439_v3, %v1229_v5  ;;  %vm1243_vm8 = vcmp.ge.f32.partialorder %v1239_v24, 0.0  ;;  %v1247_v9 = vmul.f32 0.1, %v1239_v24 }
 0x290   : > { %v1238_v10 = vadd.f32 %v1439_v3, %v1227_v7  ;;  %vm1241_vm9 = vcmp.ge.f32.partialorder %v1237_v6, 0.0  ;;  %v1245_v11 = vmul.f32 0.1, %v1237_v6 }
 0x291   : > { %vm1244_vm10 = vcmp.ge.f32.partialorder %v1240_v8, 0.0  ;;  %v1248_v12 = vmul.f32 0.1, %v1240_v8  ;;  %v1251_v13 = vsel %vm1243_vm8, %v1239_v24, %v1247_v9 }
 0x292   : > { %vm1242_vm11 = vcmp.ge.f32.partialorder %v1238_v10, 0.0  ;;  %v1246_v14 = vmul.f32 0.1, %v1238_v10  ;;  %v1249_v15 = vsel %vm1241_vm9, %v1237_v6, %v1245_v11  ;;  %v1255_v16 = vpack.c.bf16 %v1251_v13, %v1251_v13 }
 0x293   : > { %v1252_v17 = vsel %vm1244_vm10, %v1240_v8, %v1248_v12  ;;  %v1253_v18 = vpack.c.bf16 %v1249_v15, %v1249_v15 }
 0x294   : > { %v1250_v19 = vsel %vm1242_vm11, %v1238_v10, %v1246_v14  ;;  %v1256_v20 = vpack.c.bf16 %v1252_v17, %v1252_v17  ;;  %1259 = vst.msk [vmem:[%s271_s13 + $0x8] sm:$0xf] %vm741_vm3, %v1255_v16 }
 0x295   : > { %v1254_v21 = vpack.c.bf16 %v1250_v19, %v1250_v19  ;;  %1257 = vst.msk [vmem:[%s271_s13] sm:$0xf] %vm741_vm3, %v1253_v18 }
 0x296   : > { %1260 = vst.msk [vmem:[%s271_s13 + $0xc] sm:$0xf] %vm741_vm3, %v1256_v20 }
 0x297   : > { %1258 = vst.msk [vmem:[%s271_s13 + $0x4] sm:$0xf] %vm741_vm3, %v1254_v21 }
 0x298   : > { %1740 = shalt.err (!%p1737_p1)
}
 0x299   : > { %s1741_s24 = scalar_lea.hbm %s2153_s15, 256  ;;  %s1745_s8 = scalar_lea.hbm %s2207_s5, 512 }
 0x29a   : > { %p1742_p13 = scmp.ne.s32.totalorder %s2153_s15, %s1741_s24  ;;  %p1746_p4 = scmp.lt.u32.totalorder %s2153_s15, %s2207_s5 }
 0x29b   : > { %p1747_p5 = scmp.lt.u32.totalorder %s1745_s8, %s1741_s24  ;;  %p1749_p11 = scmp.lt.u32.totalorder %s1741_s24, %s2153_s15 }
 0x29c   : > { %p1743_p6 = pnand %p1742_p13, %p2223_p0 }
 0x29d   : > { %p1748_p8 = por %p1747_p5, %p1746_p4 }
 0x29e   : > { %p1744_p10 = pneg %p1743_p6 }
 0x29f   : > { %p1750_p2 = por %p1749_p11, %p1748_p8 }
 0x2a1   : > { %p1751_p3 = pnand %p1750_p2, %p1744_p10 }
 0x2a3   : > { %1754 = shalt.err (!%p1751_p3)
}
 0x2a4   : > { %s1806_s13 = smov 64   ;;  %s1807_s7 = smov 4  }
 0x2a5   : > { %1564 = dma.vmem_to_hbm [thread:$0]  (%p2223_p0), %s2155_s30, 256, %s2153_s15, %s1262_s22, %s1806_s13, %s1806_s13, %s1807_s7  }
 0x2a6 PF: > { %s1290_s28 = sand.u32 1, %s1785_s18   ;;  %p2224_p7 = scmp.ne.s32.totalorder %s2213_s25, 0 }
 0x2a7   : > { %p2225_p9 = scmp.ge.s32.totalorder %s1797_s21, 2  ;;  %s1291_s14 = scalar_lea.sflag [#allocation7], %s1290_s28 }
 0x2a9   : > { %p1578_p12 = pnand %p2225_p9, %p2224_p7 }
 0x2ab   : > { %1780 = dma.done.wait (!%p1578_p12), %s1291_s14, 256  }
 0x2ac   : > { %1782 = vsyncadd (!%p1578_p12), %s1291_s14, 4294967040  ;;  %p19_p1 = scmp.ge.s32.totalorder %s1954_s29, 4   ;;  %s2226_s18 = smov %s1789_s19 }
 0x2ad   : > { %s2227_s19 = smov %s1793_s20  ;;  %s2228_s20 = smov %s1970_s27 }
 0x2ae   : > { %s2229_s21 = smov %s1954_s29  ;;  %21 = sbr.rel (!%p19_p1) target bundleno = 6 (0x6), region = 105 }
 0x2b5   :  { %1296 = vsyncpa [#allocation6], 1 }
 0x2b6   :  { %1298 = vsyncpa [#allocation6 + $0x1], 1 }
 0x2b7   :  { %1299 = vsyncpa [#allocation9], 1 }
 0x2b8   :  { %1300 = vsyncpa [#allocation7], 1 }
 0x2b9   :  { %1302 = vsyncpa [#allocation7 + $0x1], 1 }

</bundles_post_ra>
